<compile_context>
chip_gen: v5e
topology: v5e:2x2
jax: 0.10.0
libtpu: 0.0.40
codegen_flags: <defaults>
</compile_context>

<pallas_src>
import functools

import jax
import jax.numpy as jnp
from jax.experimental import pallas as pl
from jax.experimental.pallas import tpu as pltpu

IN_DIM = 784          # 1 * 28 * 28 (unpadded; equals full array dim in block)
HID = 500
HID_PAD = 512         # 4 x 128 lanes
OUT = 10
OUT_PAD = 128         # lane-dense output -> unmasked stores


def _round_up(x, m):
    return ((x + m - 1) // m) * m


def _mlp_kernel(x_ref, w1_ref, b1_ref, w2_ref, b2_ref, w3_ref, b3_ref, o_ref):
    # In-kernel cast: x arrives f32, cast to bf16 for the MXU (cheap VPU op,
    # hidden under the matmuls; avoids an extra HBM pass in the wrapper).
    x = x_ref[...].astype(jnp.bfloat16)
    # fc1 + ReLU   (bf16 x bf16 -> f32 accumulation on the MXU)
    h1 = jnp.dot(x, w1_ref[...], preferred_element_type=jnp.float32)
    h1 = jnp.maximum(h1 + b1_ref[...], 0.0)
    # fc2 + ReLU
    h2 = jnp.dot(h1.astype(jnp.bfloat16), w2_ref[...],
                 preferred_element_type=jnp.float32)
    h2 = jnp.maximum(h2 + b2_ref[...], 0.0)
    # fc3 (no activation); padded output lanes stay zero (zero weights/bias)
    out = jnp.dot(h2.astype(jnp.bfloat16), w3_ref[...],
                  preferred_element_type=jnp.float32) + b3_ref[...]
    o_ref[...] = out.astype(o_ref.dtype)


def prepare_params(params):
    """One-time pad (500->512, 10->128) + bf16 cast of the f32 weights.

    params: w1 (784,500), b1 (1,500), w2 (500,500), b2 (1,500),
            w3 (500,10), b3 (1,10)   -- all float32, (in, out) layout.
    """
    w1 = jnp.pad(params["w1"], ((0, 0), (0, HID_PAD - HID))).astype(jnp.bfloat16)
    b1 = jnp.pad(params["b1"], ((0, 0), (0, HID_PAD - HID)))  # f32
    w2 = jnp.pad(params["w2"], ((0, HID_PAD - HID), (0, HID_PAD - HID))
                 ).astype(jnp.bfloat16)
    b2 = jnp.pad(params["b2"], ((0, 0), (0, HID_PAD - HID)))  # f32
    w3 = jnp.pad(params["w3"], ((0, HID_PAD - HID), (0, OUT_PAD - OUT))
                 ).astype(jnp.bfloat16)
    b3 = jnp.pad(params["b3"], ((0, 0), (0, OUT_PAD - OUT)))  # f32
    return dict(w1=w1, b1=b1, w2=w2, b2=b2, w3=w3, b3=b3)


@functools.partial(jax.jit, static_argnames=("batch_tile",))
def fcl_forward(x_nchw, prepared, batch_tile=1024):
    """Forward pass of FCL.  x_nchw: (B, 1, 28, 28) f32 -> (B, 10) f32."""
    b = x_nchw.shape[0]
    x = x_nchw.reshape(b, -1)            # torch.flatten(x, 1); stays f32

    # Minimal sublane padding only: round batch to a multiple of 16
    # (bf16-native sublane packing); at most 15 zero rows.
    b16 = _round_up(b, 16)
    if b16 != b:
        x = jnp.pad(x, ((0, b16 - b), (0, 0)))

    # Tile choice: large tiles amortize the ~0.35us/step pipeline overhead,
    # but cap so the grid has >= 2 steps whenever possible so the "parallel"
    # batch axis can feed both TensorCores on v7x.
    tb = min(batch_tile, b16)
    if b16 >= 32:
        tb = min(tb, _round_up(pl.cdiv(b16, 2), 16))
    grid = (pl.cdiv(b16, tb),)           # partial last block handled by Pallas

    out = pl.pallas_call(
        _mlp_kernel,
        out_shape=jax.ShapeDtypeStruct((b16, OUT_PAD), jnp.float32),
        grid_spec=pltpu.PrefetchScalarGridSpec(
            num_scalar_prefetch=0,
            grid=grid,
            in_specs=[
                pl.BlockSpec((tb, IN_DIM), lambda i: (i, 0)),        # x tile (f32)
                pl.BlockSpec((IN_DIM, HID_PAD), lambda i: (0, 0)),   # w1 (resident)
                pl.BlockSpec((1, HID_PAD), lambda i: (0, 0)),        # b1
                pl.BlockSpec((HID_PAD, HID_PAD), lambda i: (0, 0)),  # w2
                pl.BlockSpec((1, HID_PAD), lambda i: (0, 0)),        # b2
                pl.BlockSpec((HID_PAD, OUT_PAD), lambda i: (0, 0)),  # w3
                pl.BlockSpec((1, OUT_PAD), lambda i: (0, 0)),        # b3
            ],
            out_specs=pl.BlockSpec((tb, OUT_PAD), lambda i: (i, 0)),
        ),
        compiler_params=pltpu.CompilerParams(
            dimension_semantics=("parallel",),   # shard batch tiles on v7x's 2 TCs
            vmem_limit_bytes=32 * 1024 * 1024,   # covers tb=1024 on v5e's default
        ),
    )(
        x,
        prepared["w1"], prepared["b1"],
        prepared["w2"], prepared["b2"],
        prepared["w3"], prepared["b3"],
    )
    return out[:b, :OUT]


def init_params(key):
    """Mirror nn.Linear default init: U(-1/sqrt(fan_in), 1/sqrt(fan_in)).
    Weights stored as (in, out) so the kernel computes x @ W."""
    dims = [(IN_DIM, HID), (HID, HID), (HID, OUT)]
    params = {}
    keys = jax.random.split(key, 2 * len(dims))
    for i, (fan_in, fan_out) in enumerate(dims):
        bound = 1.0 / (fan_in ** 0.5)
        params[f"w{i + 1}"] = jax.random.uniform(
            keys[2 * i], (fan_in, fan_out), jnp.float32, -bound, bound)
        params[f"b{i + 1}"] = jax.random.uniform(
            keys[2 * i + 1], (1, fan_out), jnp.float32, -bound, bound)
    return params


def _ref_forward(x_nchw, params):
    """Pure-JAX reference emulating the same bf16-input / f32-accum math."""
    x = x_nchw.reshape(x_nchw.shape[0], -1).astype(jnp.bfloat16)
    h1 = jnp.dot(x, params["w1"].astype(jnp.bfloat16),
                 preferred_element_type=jnp.float32) + params["b1"]
    h1 = jnp.maximum(h1, 0.0)
    h2 = jnp.dot(h1.astype(jnp.bfloat16), params["w2"].astype(jnp.bfloat16),
                 preferred_element_type=jnp.float32) + params["b2"]
    h2 = jnp.maximum(h2, 0.0)
    return jnp.dot(h2.astype(jnp.bfloat16), params["w3"].astype(jnp.bfloat16),
                   preferred_element_type=jnp.float32) + params["b3"]


if __name__ == "__main__":
    key = jax.random.PRNGKey(0)
    pkey, xkey1, xkey2 = jax.random.split(key, 3)

    params = init_params(pkey)
    prepared = prepare_params(params)

    # 1) Tiny batch (pads 2 -> 16 rows internally, single grid step).
    x_small = jax.random.normal(xkey1, (2, 1, 28, 28), dtype=jnp.float32)
    logits_small = jax.block_until_ready(fcl_forward(x_small, prepared))
    ref_small = _ref_forward(x_small, params)
    assert logits_small.shape == (2, 10)
    assert jnp.allclose(logits_small, ref_small, atol=1e-2, rtol=1e-2), (
        float(jnp.max(jnp.abs(logits_small - ref_small))))

    # 2) Non-divisible batch (40 -> pad 48, two tiles, partial last block).
    x_mid = jax.random.normal(xkey2, (40, 1, 28, 28), dtype=jnp.float32)
    logits_mid = jax.block_until_ready(fcl_forward(x_mid, prepared))
    ref_mid = _ref_forward(x_mid, params)
    assert logits_mid.shape == (40, 10)
    assert jnp.allclose(logits_mid, ref_mid, atol=1e-2, rtol=1e-2), (
        float(jnp.max(jnp.abs(logits_mid - ref_mid))))

    print("KERNEL_OK")
</pallas_src>

<mosaic_0001>
module attributes {stable_mosaic.version = 11 : i64} {
  func.func @_mlp_kernel(%arg0: i32, %arg1: memref<16x784xf32, #tpu.memory_space<vmem>>, %arg2: memref<784x512xbf16, #tpu.memory_space<vmem>>, %arg3: memref<1x512xf32, #tpu.memory_space<vmem>>, %arg4: memref<512x512xbf16, #tpu.memory_space<vmem>>, %arg5: memref<1x512xf32, #tpu.memory_space<vmem>>, %arg6: memref<512x128xbf16, #tpu.memory_space<vmem>>, %arg7: memref<1x128xf32, #tpu.memory_space<vmem>>, %arg8: memref<16x128xf32, #tpu.memory_space<vmem>>) attributes {dimension_semantics = [#tpu.dimension_semantics<parallel>], iteration_bounds = array<i64: 1>, scalar_prefetch = 0 : i64, scratch_operands = 0 : i64, tpu.core_type = #tpu.core_type<tc>, window_params = [{transform_indices = @transform_0, window_bounds = array<i64: 16, 784>}, {pipeline_mode = #tpu.pipeline_mode<synchronous>, transform_indices = @transform_1, window_bounds = array<i64: 784, 512>}, {pipeline_mode = #tpu.pipeline_mode<synchronous>, transform_indices = @transform_2, window_bounds = array<i64: 1, 512>}, {pipeline_mode = #tpu.pipeline_mode<synchronous>, transform_indices = @transform_3, window_bounds = array<i64: 512, 512>}, {pipeline_mode = #tpu.pipeline_mode<synchronous>, transform_indices = @transform_4, window_bounds = array<i64: 1, 512>}, {pipeline_mode = #tpu.pipeline_mode<synchronous>, transform_indices = @transform_5, window_bounds = array<i64: 512, 128>}, {pipeline_mode = #tpu.pipeline_mode<synchronous>, transform_indices = @transform_6, window_bounds = array<i64: 1, 128>}, {transform_indices = @transform_7, window_bounds = array<i64: 16, 128>}]} {
    %c0 = arith.constant 0 : index
    %c0_0 = arith.constant 0 : index
    %0 = vector.load %arg1[%c0, %c0_0] : memref<16x784xf32, #tpu.memory_space<vmem>>, vector<16x784xf32>
    %1 = arith.truncf %0 : vector<16x784xf32> to vector<16x784xbf16>
    %c0_1 = arith.constant 0 : index
    %c0_2 = arith.constant 0 : index
    %2 = vector.load %arg2[%c0_1, %c0_2] : memref<784x512xbf16, #tpu.memory_space<vmem>>, vector<784x512xbf16>
    %cst = arith.constant dense<0.000000e+00> : vector<16x512xf32>
    %3 = tpu.matmul %1, %2, %cst {dimension_numbers = #tpu.dot_dimension_numbers<[1], [0], [0], [1], [0, 0, 1, 1], [], []>} : vector<16x784xbf16>, vector<784x512xbf16>, vector<16x512xf32> -> vector<16x512xf32>
    %c0_3 = arith.constant 0 : index
    %c0_4 = arith.constant 0 : index
    %4 = vector.load %arg3[%c0_3, %c0_4] : memref<1x512xf32, #tpu.memory_space<vmem>>, vector<1x512xf32>
    %5 = vector.broadcast %4 : vector<1x512xf32> to vector<16x512xf32>
    %6 = arith.addf %3, %5 : vector<16x512xf32>
    %cst_5 = arith.constant 0.000000e+00 : f32
    %7 = vector.broadcast %cst_5 : f32 to vector<16x512xf32>
    %8 = arith.maximumf %6, %7 : vector<16x512xf32>
    %9 = arith.truncf %8 : vector<16x512xf32> to vector<16x512xbf16>
    %c0_6 = arith.constant 0 : index
    %c0_7 = arith.constant 0 : index
    %10 = vector.load %arg4[%c0_6, %c0_7] : memref<512x512xbf16, #tpu.memory_space<vmem>>, vector<512x512xbf16>
    %cst_8 = arith.constant dense<0.000000e+00> : vector<16x512xf32>
    %11 = tpu.matmul %9, %10, %cst_8 {dimension_numbers = #tpu.dot_dimension_numbers<[1], [0], [0], [1], [0, 0, 1, 1], [], []>} : vector<16x512xbf16>, vector<512x512xbf16>, vector<16x512xf32> -> vector<16x512xf32>
    %c0_9 = arith.constant 0 : index
    %c0_10 = arith.constant 0 : index
    %12 = vector.load %arg5[%c0_9, %c0_10] : memref<1x512xf32, #tpu.memory_space<vmem>>, vector<1x512xf32>
    %13 = vector.broadcast %12 : vector<1x512xf32> to vector<16x512xf32>
    %14 = arith.addf %11, %13 : vector<16x512xf32>
    %cst_11 = arith.constant 0.000000e+00 : f32
    %15 = vector.broadcast %cst_11 : f32 to vector<16x512xf32>
    %16 = arith.maximumf %14, %15 : vector<16x512xf32>
    %17 = arith.truncf %16 : vector<16x512xf32> to vector<16x512xbf16>
    %c0_12 = arith.constant 0 : index
    %c0_13 = arith.constant 0 : index
    %18 = vector.load %arg6[%c0_12, %c0_13] : memref<512x128xbf16, #tpu.memory_space<vmem>>, vector<512x128xbf16>
    %cst_14 = arith.constant dense<0.000000e+00> : vector<16x128xf32>
    %19 = tpu.matmul %17, %18, %cst_14 {dimension_numbers = #tpu.dot_dimension_numbers<[1], [0], [0], [1], [0, 0, 1, 1], [], []>} : vector<16x512xbf16>, vector<512x128xbf16>, vector<16x128xf32> -> vector<16x128xf32>
    %c0_15 = arith.constant 0 : index
    %c0_16 = arith.constant 0 : index
    %20 = vector.load %arg7[%c0_15, %c0_16] : memref<1x128xf32, #tpu.memory_space<vmem>>, vector<1x128xf32>
    %21 = vector.broadcast %20 : vector<1x128xf32> to vector<16x128xf32>
    %22 = arith.addf %19, %21 : vector<16x128xf32>
    %c0_17 = arith.constant 0 : index
    %c0_18 = arith.constant 0 : index
    %23 = vector.load %arg8[%c0_17, %c0_18] : memref<16x128xf32, #tpu.memory_space<vmem>>, vector<16x128xf32>
    tpu.vector_store %arg8[%c0_17, %c0_18], %22 {strides = array<i32>} : memref<16x128xf32, #tpu.memory_space<vmem>>, vector<16x128xf32>,
    return
  }
  func.func @transform_0(%arg0: i32) -> (i32, i32) {
    %c0_i32 = arith.constant 0 : i32
    %c0_i32_0 = arith.constant 0 : i32
    return %arg0, %c0_i32 : i32, i32
  }
  func.func @transform_1(%arg0: i32) -> (i32, i32) {
    %c0_i32 = arith.constant 0 : i32
    %c0_i32_0 = arith.constant 0 : i32
    %c0_i32_1 = arith.constant 0 : i32
    return %c0_i32, %c0_i32_0 : i32, i32
  }
  func.func @transform_2(%arg0: i32) -> (i32, i32) {
    %c0_i32 = arith.constant 0 : i32
    %c0_i32_0 = arith.constant 0 : i32
    %c0_i32_1 = arith.constant 0 : i32
    return %c0_i32, %c0_i32_0 : i32, i32
  }
  func.func @transform_3(%arg0: i32) -> (i32, i32) {
    %c0_i32 = arith.constant 0 : i32
    %c0_i32_0 = arith.constant 0 : i32
    %c0_i32_1 = arith.constant 0 : i32
    return %c0_i32, %c0_i32_0 : i32, i32
  }
  func.func @transform_4(%arg0: i32) -> (i32, i32) {
    %c0_i32 = arith.constant 0 : i32
    %c0_i32_0 = arith.constant 0 : i32
    %c0_i32_1 = arith.constant 0 : i32
    return %c0_i32, %c0_i32_0 : i32, i32
  }
  func.func @transform_5(%arg0: i32) -> (i32, i32) {
    %c0_i32 = arith.constant 0 : i32
    %c0_i32_0 = arith.constant 0 : i32
    %c0_i32_1 = arith.constant 0 : i32
    return %c0_i32, %c0_i32_0 : i32, i32
  }
  func.func @transform_6(%arg0: i32) -> (i32, i32) {
    %c0_i32 = arith.constant 0 : i32
    %c0_i32_0 = arith.constant 0 : i32
    %c0_i32_1 = arith.constant 0 : i32
    return %c0_i32, %c0_i32_0 : i32, i32
  }
  func.func @transform_7(%arg0: i32) -> (i32, i32) {
    %c0_i32 = arith.constant 0 : i32
    %c0_i32_0 = arith.constant 0 : i32
    return %arg0, %c0_i32 : i32, i32
  }
}

</mosaic_0001>

<bundles_post_ra>
// kernel: fcl_forward.1
= control target key start
LH: loop header
LB: loop body
LE: loop exit
PB: predicated region body
PF: predicated region fallthrough
CT: control target
= control target key end

     0   :  { %12 = vsyncpa [#allocation3], 0  ;;  %s5159_s0 = inlined_call_operand.vmem [shape: f32[16,784], index: 0, kind: input, shape index: {}]   ;;  %s5160_s1 = inlined_call_operand.hbm [shape: bf16[784,512], index: 1, kind: input, shape index: {}]   ;;  %s5161_s2 = inlined_call_operand.vmem [shape: f32[1,512], index: 2, kind: input, shape index: {}]   ;;  %s5162_s3 = inlined_call_operand.hbm [shape: bf16[512,512], index: 3, kind: input, shape index: {}]   ;;  %s5163_s4 = inlined_call_operand.vmem [shape: f32[1,512], index: 4, kind: input, shape index: {}]   ;;  %s5164_s5 = inlined_call_operand.vmem [shape: bf16[512,128], index: 5, kind: input, shape index: {}]   ;;  %s5165_s6 = inlined_call_operand.vmem [shape: f32[1,128], index: 6, kind: input, shape index: {}]   ;;  %s5166_s7 = inlined_call_operand.vmem [shape: f32[16,128], index: 7, kind: output, shape index: {}]  }
   0x1   :  { %s20_s26 = sshll.u32 %s5160_s1, 4  ;;  %s21_s26 = int_to_ptr.hbm [resolvable:$true] %s20_s26 }
   0x2   :  { %13 = vsyncpa [#allocation5], 0  ;;  %s4853_s27 = smov [#allocation2]   ;;  %s35_s8 = sshll.u32 %s5162_s3, 4  ;;  %s36_s8 = int_to_ptr.hbm [resolvable:$true] %s35_s8 }
   0x3   :  { %s22_s28 = sshll.u32 %s4853_s27, 4  ;;  %s4854_s9 = smov 256   ;;  %s23_s28 = int_to_ptr.vmem [resolvable:$true] %s22_s28 }
   0x4   :  { %s4855_s10 = smov 16   ;;  %s4856_s11 = smov [#allocation4]  }
   0x5   :  { %28 = dma.hbm_to_vmem [thread:$0]  %s21_s26, 25088, %s23_s28, [#allocation3], %s4854_s9, %s4854_s9, %s4855_s10  }
   0x6   :  { %s37_s12 = sshll.u32 %s4856_s11, 4  ;;  %s38_s12 = int_to_ptr.vmem [resolvable:$true] %s37_s12 }
   0x7   :  { %43 = dma.hbm_to_vmem [thread:$0]  %s36_s8, 16384, %s38_s12, [#allocation5], %s4854_s9, %s4854_s9, %s4855_s10  }
   0x8   :  { %4849 = dma.done.wait [#allocation3], 25088  }
   0x9   :  { %4850 = vsyncadd [#allocation3], 4294942208 }
   0xa   :  { %4851 = dma.done.wait [#allocation5], 16384  }
   0xb   :  { %4852 = vsyncadd [#allocation5], 4294950912  ;;  %v3126_v0 = vld [vmem:[#allocation2 + $0xe0] sm:$0xf]  ;;  %v4470_v1 = vld [vmem:[#allocation2 + $0xec] sm:$0xf0] }
   0xc   :  { %v3254_v2 = vld [vmem:[#allocation2 + $0x1e0] sm:$0xf]  ;;  %v3127_v3 = vor.u32 %v4470_v1, %v3126_v0  ;;  %v4502_v4 = vld [vmem:[#allocation2 + $0x1ec] sm:$0xf0]  ;;  %vm1266_vm0 = vcmask 130048  }
   0xd   :  { %v3382_v5 = vld [vmem:[#allocation2 + $0x2e0] sm:$0xf]  ;;  %v4534_v6 = vld [vmem:[#allocation2 + $0x2ec] sm:$0xf0]  ;;  %v3255_v7 = vor.u32 %v4502_v4, %v3254_v2 }
   0xe   :  { %v3383_v8 = vor.u32 %v4534_v6, %v3382_v5  ;;  %v3510_v9 = vld [vmem:[#allocation2 + $0x3e0] sm:$0xf]  ;;  %v4566_v10 = vld [vmem:[#allocation2 + $0x3ec] sm:$0xf0]  ;;  %1270 = vmatpush.bf16.msra.mxu0 %v3127_v3 }
   0xf   :  { %v3110_v11 = vld [vmem:[#allocation2 + $0xc0] sm:$0xf]  ;;  %v3511_v12 = vor.u32 %v4566_v10, %v3510_v9  ;;  %v4466_v13 = vld [vmem:[#allocation2 + $0xcc] sm:$0xf0]  ;;  %1284 = vmatpush.bf16.msra.mxu1 %v3255_v7 }
  0x10   :  { %v3238_v14 = vld [vmem:[#allocation2 + $0x1c0] sm:$0xf]  ;;  %v4498_v15 = vld [vmem:[#allocation2 + $0x1cc] sm:$0xf0]  ;;  %1298 = vmatpush.bf16.msra.mxu2 %v3383_v8  ;;  %v3111_v16 = vor.u32 %v4466_v13, %v3110_v11 }
  0x11   :  { %v3239_v17 = vor.u32 %v4498_v15, %v3238_v14  ;;  %v3366_v18 = vld [vmem:[#allocation2 + $0x2c0] sm:$0xf]  ;;  %v4530_v19 = vld [vmem:[#allocation2 + $0x2cc] sm:$0xf0]  ;;  %1312 = vmatpush.bf16.msra.mxu3 %v3511_v12 }
  0x12   :  { %v3494_v20 = vld [vmem:[#allocation2 + $0x3c0] sm:$0xf]  ;;  %v3367_v21 = vor.u32 %v4530_v19, %v3366_v18  ;;  %v4562_v22 = vld [vmem:[#allocation2 + $0x3cc] sm:$0xf0]  ;;  %1271 = vmatpush.bf16.msra.mxu0 %v3111_v16 }
  0x13   :  { %v3094_v23 = vld [vmem:[#allocation2 + $0xa0] sm:$0xf]  ;;  %v4462_v24 = vld [vmem:[#allocation2 + $0xac] sm:$0xf0]  ;;  %v3495_v25 = vor.u32 %v4562_v22, %v3494_v20  ;;  %1285 = vmatpush.bf16.msra.mxu1 %v3239_v17 }
  0x14   :  { %v3222_v26 = vld [vmem:[#allocation2 + $0x1a0] sm:$0xf]  ;;  %v4494_v27 = vld [vmem:[#allocation2 + $0x1ac] sm:$0xf0]  ;;  %v3095_v29 = vor.u32 %v4462_v24, %v3094_v23  ;;  %1299 = vmatpush.bf16.msra.mxu2 %v3367_v21 }
  0x15   :  { %v3350_v28 = vld [vmem:[#allocation2 + $0x2a0] sm:$0xf]  ;;  %v4526_v30 = vld [vmem:[#allocation2 + $0x2ac] sm:$0xf0]  ;;  %v3223_v33 = vor.u32 %v4494_v27, %v3222_v26  ;;  %1313 = vmatpush.bf16.msra.mxu3 %v3495_v25 }
  0x16   :  { %v3478_v31 = vld [vmem:[#allocation2 + $0x3a0] sm:$0xf]  ;;  %v4558_v32 = vld [vmem:[#allocation2 + $0x3ac] sm:$0xf0]  ;;  %v3351_v34 = vor.u32 %v4526_v30, %v3350_v28  ;;  %1272 = vmatpush.bf16.msra.mxu0 %v3095_v29 }
  0x17   :  { %v3078_v35 = vld [vmem:[#allocation2 + $0x80] sm:$0xf]  ;;  %v4458_v36 = vld [vmem:[#allocation2 + $0x8c] sm:$0xf0]  ;;  %v3479_v38 = vor.u32 %v4558_v32, %v3478_v31  ;;  %1286 = vmatpush.bf16.msra.mxu1 %v3223_v33  ;;  %v4468_v32 = vld [vmem:[#allocation2 + $0xe4] sm:$0xf] }
  0x18   :  { %v3206_v37 = vld [vmem:[#allocation2 + $0x180] sm:$0xf]  ;;  %v4490_v39 = vld [vmem:[#allocation2 + $0x18c] sm:$0xf0]  ;;  %v3079_v44 = vor.u32 %v4458_v36, %v3078_v35  ;;  %1300 = vmatpush.bf16.msra.mxu2 %v3351_v34  ;;  %v3128_v33 = vld [vmem:[#allocation2 + $0xf0] sm:$0xf0] }
  0x19   :  { %v3334_v40 = vld [vmem:[#allocation2 + $0x280] sm:$0xf]  ;;  %v4522_v41 = vld [vmem:[#allocation2 + $0x28c] sm:$0xf0]  ;;  %v3207_v45 = vor.u32 %v4490_v39, %v3206_v37  ;;  %1314 = vmatpush.bf16.msra.mxu3 %v3479_v38  ;;  %v68_v36 = vld [vmem:[%s5159_s0 + $0x48] sm:$0xff] }
  0x1a   :  { %v3462_v42 = vld [vmem:[#allocation2 + $0x380] sm:$0xf]  ;;  %v4554_v43 = vld [vmem:[#allocation2 + $0x38c] sm:$0xf0]  ;;  %v3335_v46 = vor.u32 %v4522_v41, %v3334_v40  ;;  %1273 = vmatpush.bf16.msra.mxu0 %v3079_v44  ;;  %v4500_v41 = vld [vmem:[#allocation2 + $0x1e4] sm:$0xf] }
  0x1b   :  { %v3062_v47 = vld [vmem:[#allocation2 + $0x60] sm:$0xf]  ;;  %v4454_v48 = vld [vmem:[#allocation2 + $0x6c] sm:$0xf0]  ;;  %v3463_v50 = vor.u32 %v4554_v43, %v3462_v42  ;;  %1287 = vmatpush.bf16.msra.mxu1 %v3207_v45  ;;  %v66_v43 = vld [vmem:[%s5159_s0 + $0x38] sm:$0xff] }
  0x1c   :  { %v3190_v49 = vld [vmem:[#allocation2 + $0x160] sm:$0xf]  ;;  %v4486_v51 = vld [vmem:[#allocation2 + $0x16c] sm:$0xf0]  ;;  %v3063_v56 = vor.u32 %v4454_v48, %v3062_v47  ;;  %1301 = vmatpush.bf16.msra.mxu2 %v3335_v46  ;;  %v3256_v46 = vld [vmem:[#allocation2 + $0x1f0] sm:$0xf0] }
  0x1d   :  { %v3318_v52 = vld [vmem:[#allocation2 + $0x260] sm:$0xf]  ;;  %v4518_v53 = vld [vmem:[#allocation2 + $0x26c] sm:$0xf0]  ;;  %v3191_v57 = vor.u32 %v4486_v51, %v3190_v49  ;;  %1315 = vmatpush.bf16.msra.mxu3 %v3463_v50  ;;  %v62_v47 = vld [vmem:[%s5159_s0 + $0x18] sm:$0xff]  ;;  %v3131_v50 = vor.u32 %v4468_v32, %v3128_v33 }
  0x1e   :  { %v3446_v54 = vld [vmem:[#allocation2 + $0x360] sm:$0xf]  ;;  %v4550_v55 = vld [vmem:[#allocation2 + $0x36c] sm:$0xf0]  ;;  %v3319_v58 = vor.u32 %v4518_v53, %v3318_v52  ;;  %1274 = vmatpush.bf16.msra.mxu0 %v3063_v56 }
  0x1f   :  { %v3046_v59 = vld [vmem:[#allocation2 + $0x40] sm:$0xf]  ;;  %v4450_v60 = vld [vmem:[#allocation2 + $0x4c] sm:$0xf0]  ;;  %v3447_v62 = vor.u32 %v4550_v55, %v3446_v54  ;;  %1288 = vmatpush.bf16.msra.mxu1 %v3191_v57  ;;  %v4464_v57 = vld [vmem:[#allocation2 + $0xc4] sm:$0xf] }
  0x20   :  { %v3174_v61 = vld [vmem:[#allocation2 + $0x140] sm:$0xf]  ;;  %v4482_v63 = vld [vmem:[#allocation2 + $0x14c] sm:$0xf0]  ;;  %v3047_v4 = vor.u32 %v4450_v60, %v3046_v59  ;;  %1302 = vmatpush.bf16.msra.mxu2 %v3319_v58  ;;  %v3112_v58 = vld [vmem:[#allocation2 + $0xd0] sm:$0xf0] }
  0x21   :  { %v3302_v0 = vld [vmem:[#allocation2 + $0x240] sm:$0xf]  ;;  %v4514_v1 = vld [vmem:[#allocation2 + $0x24c] sm:$0xf0]  ;;  %v3175_v6 = vor.u32 %v4482_v63, %v3174_v61  ;;  %1316 = vmatpush.bf16.msra.mxu3 %v3447_v62  ;;  %v60_v61 = vld [vmem:[%s5159_s0 + $0x8] sm:$0xff]  ;;  %v3259_v63 = vor.u32 %v4500_v41, %v3256_v46 }
  0x22   :  { %v3430_v2 = vld [vmem:[#allocation2 + $0x340] sm:$0xf]  ;;  %v4546_v3 = vld [vmem:[#allocation2 + $0x34c] sm:$0xf0]  ;;  %v3303_v7 = vor.u32 %v4514_v1, %v3302_v0  ;;  %1275 = vmatpush.bf16.msra.mxu0 %v3047_v4  ;;  %v4496_v1 = vld [vmem:[#allocation2 + $0x1c4] sm:$0xf]  ;;  %v3115_v4 = vor.u32 %v4464_v57, %v3112_v58 }
  0x23   :  { %v3030_v5 = vld [vmem:[#allocation2 + $0x20] sm:$0xf]  ;;  %v4446_v8 = vld [vmem:[#allocation2 + $0x2c] sm:$0xf0]  ;;  %v3431_v11 = vor.u32 %v4546_v3, %v3430_v2  ;;  %1289 = vmatpush.bf16.msra.mxu1 %v3175_v6  ;;  %v3240_v2 = vld [vmem:[#allocation2 + $0x1d0] sm:$0xf0] }
  0x24   :  { %v3158_v9 = vld [vmem:[#allocation2 + $0x120] sm:$0xf]  ;;  %v4478_v10 = vld [vmem:[#allocation2 + $0x12c] sm:$0xf0]  ;;  %v3031_v18 = vor.u32 %v4446_v8, %v3030_v5  ;;  %1303 = vmatpush.bf16.msra.mxu2 %v3303_v7  ;;  %v3192_v41 = vld [vmem:[#allocation2 + $0x170] sm:$0xf0] }
  0x25   :  { %v3286_v12 = vld [vmem:[#allocation2 + $0x220] sm:$0xf]  ;;  %v4510_v13 = vld [vmem:[#allocation2 + $0x22c] sm:$0xf0]  ;;  %v3159_v23 = vor.u32 %v4478_v10, %v3158_v9  ;;  %1317 = vmatpush.bf16.msra.mxu3 %v3431_v11  ;;  %v4460_v10 = vld [vmem:[#allocation2 + $0xa4] sm:$0xf] }
  0x26   :  { %v3414_v14 = vld [vmem:[#allocation2 + $0x320] sm:$0xf]  ;;  %v4542_v15 = vld [vmem:[#allocation2 + $0x32c] sm:$0xf0]  ;;  %v3287_v24 = vor.u32 %v4510_v13, %v3286_v12  ;;  %1276 = vmatpush.bf16.msra.mxu0 %v3031_v18  ;;  %v3096_v11 = vld [vmem:[#allocation2 + $0xb0] sm:$0xf0]  ;;  %v3243_v12 = vor.u32 %v4496_v1, %v3240_v2 }
  0x27   :  { %v3014_v16 = vld [vmem:[#allocation2] sm:$0xf]  ;;  %v4442_v17 = vld [vmem:[#allocation2 + $0xc] sm:$0xf0]  ;;  %v3415_v28 = vor.u32 %v4542_v15, %v3414_v14  ;;  %1290 = vmatpush.bf16.msra.mxu1 %v3159_v23  ;;  %v4492_v14 = vld [vmem:[#allocation2 + $0x1a4] sm:$0xf] }
  0x28   :  { %v3142_v19 = vld [vmem:[#allocation2 + $0x100] sm:$0xf]  ;;  %v4474_v20 = vld [vmem:[#allocation2 + $0x10c] sm:$0xf0]  ;;  %v3015_v35 = vor.u32 %v4442_v17, %v3014_v16  ;;  %1304 = vmatpush.bf16.msra.mxu2 %v3287_v24  ;;  %v3224_v15 = vld [vmem:[#allocation2 + $0x1b0] sm:$0xf0]  ;;  %v3099_v17 = vor.u32 %v4460_v10, %v3096_v11 }
  0x29   :  { %v3270_v21 = vld [vmem:[#allocation2 + $0x200] sm:$0xf]  ;;  %v4506_v22 = vld [vmem:[#allocation2 + $0x20c] sm:$0xf0]  ;;  %v3143_v39 = vor.u32 %v4474_v20, %v3142_v19  ;;  %1318 = vmatpush.bf16.msra.mxu3 %v3415_v28  ;;  %v3080_v23 = vld [vmem:[#allocation2 + $0x90] sm:$0xf0]  ;;  %v3227_v24 = vor.u32 %v4492_v14, %v3224_v15 }
  0x2a   :  { %v3398_v25 = vld [vmem:[#allocation2 + $0x300] sm:$0xf]  ;;  %v4538_v26 = vld [vmem:[#allocation2 + $0x30c] sm:$0xf0]  ;;  %v3271_v40 = vor.u32 %v4506_v22, %v3270_v21  ;;  %1277 = vmatpush.bf16.msra.mxu0 %v3015_v35  ;;  %v4456_v22 = vld [vmem:[#allocation2 + $0x84] sm:$0xf] }
  0x2b   :  { %v3638_v27 = vld [vmem:[#allocation2 + $0x4e0] sm:$0xf]  ;;  %v4598_v29 = vld [vmem:[#allocation2 + $0x4ec] sm:$0xf0]  ;;  %v3399_v44 = vor.u32 %v4538_v26, %v3398_v25  ;;  %1291 = vmatpush.bf16.msra.mxu1 %v3143_v39  ;;  %v4488_v26 = vld [vmem:[#allocation2 + $0x184] sm:$0xf] }
  0x2c   :  { %v3766_v30 = vld [vmem:[#allocation2 + $0x5e0] sm:$0xf]  ;;  %v4630_v31 = vld [vmem:[#allocation2 + $0x5ec] sm:$0xf0]  ;;  %v3639_v45 = vor.u32 %v4598_v29, %v3638_v27  ;;  %1305 = vmatpush.bf16.msra.mxu2 %v3271_v40  ;;  %v3208_v27 = vld [vmem:[#allocation2 + $0x190] sm:$0xf0]  ;;  %v3083_v29 = vor.u32 %v4456_v22, %v3080_v23 }
  0x2d   :  { %v61_v34 = vld [vmem:[%s5159_s0 + $0x10] sm:$0xff]  ;;  %v3782_v37 = vld [vmem:[#allocation2 + $0x600] sm:$0xf]  ;;  %v3767_v49 = vor.u32 %v4630_v31, %v3766_v30  ;;  %1319 = vmatpush.bf16.msra.mxu3 %v3399_v44  ;;  %v4484_v40 = vld [vmem:[#allocation2 + $0x164] sm:$0xf] }
  0x2e   :  { %v4634_v38 = vld [vmem:[#allocation2 + $0x60c] sm:$0xf0]  ;;  %v59_v42 = vld [vmem:[%s5159_s0] sm:$0xff]  ;;  %v4921_v54 = vpack.c.bf16 %v68_v36, %v61_v34  ;;  %1326 = vmatpush.bf16.msrb.mxu0 %v3639_v45  ;;  %v3064_v35 = vld [vmem:[#allocation2 + $0x70] sm:$0xf0] }
  0x2f   :  { %v69_v48 = vld [vmem:[%s5159_s0 + $0x50] sm:$0xff]  ;;  %v3622_v51 = vld [vmem:[#allocation2 + $0x4c0] sm:$0xf]  ;;  %v4923_v55 = vpack.c.bf16 %v66_v43, %v59_v42  ;;  %v3783_v59 = vor.u32 %v4634_v38, %v3782_v37  ;;  %1340 = vmatpush.bf16.msrb.mxu1 %v3767_v49  ;;  %v4452_v34 = vld [vmem:[#allocation2 + $0x64] sm:$0xf]  ;;  %v3211_v38 = vor.u32 %v4488_v26, %v3208_v27 }
  0x30   :  { %v4594_v52 = vld [vmem:[#allocation2 + $0x4cc] sm:$0xf0]  ;;  %v3750_v53 = vld [vmem:[#allocation2 + $0x5c0] sm:$0xf]  ;;  %v4925_v60 = vpack.c.bf16 %v69_v48, %v62_v47  ;;  %1306 = vmatmul.bf16.vlgmr.msra.gmra.mxu2 %v4921_v54  ;;  %v72_v37 = vld [vmem:[%s5159_s0 + $0x68] sm:$0xff]  ;;  %v3067_v43 = vor.u32 %v4452_v34, %v3064_v35 }
  0x31   :  { %v4626_v56 = vld [vmem:[#allocation2 + $0x5cc] sm:$0xf0]  ;;  %v67_v62 = vld [vmem:[%s5159_s0 + $0x40] sm:$0xff]  ;;  %v3623_v0 = vor.u32 %v4594_v52, %v3622_v51  ;;  %1368 = vmatpush.bf16.msrb.mxu3 %v3131_v50  ;;  %1278 = vmatmul.bf16.vlgmr.msra.gmra.mxu0 %v4923_v55  ;;  %v3048_v49 = vld [vmem:[#allocation2 + $0x50] sm:$0xf0]  ;;  %v3195_v51 = vor.u32 %v4484_v40, %v3192_v41 }
  0x32   :  { %v3751_v3 = vor.u32 %v4626_v56, %v3750_v53  ;;  %v3606_v5 = vld [vmem:[#allocation2 + $0x4a0] sm:$0xf]  ;;  %v4590_v6 = vld [vmem:[#allocation2 + $0x4ac] sm:$0xf0]  ;;  %v4935_v8 = vpack.c.bf16 %v67_v62, %v60_v61  ;;  %1361 = vmatpush.bf16.msrb.mxu2 %v3783_v59  ;;  %1320 = vmatmul.bf16.vlgmr.msra.gmra.mxu3 %v4925_v60  ;;  %v4448_v48 = vld [vmem:[#allocation2 + $0x44] sm:$0xf] }
  0x33   :  { %v3734_v7 = vld [vmem:[#allocation2 + $0x5a0] sm:$0xf]  ;;  %v4622_v9 = vld [vmem:[#allocation2 + $0x5ac] sm:$0xf0]  ;;  %1327 = vmatpush.bf16.msrb.mxu0 %v3623_v0  ;;  %v3607_v13 = vor.u32 %v4590_v6, %v3606_v5  ;;  %v4480_v53 = vld [vmem:[#allocation2 + $0x144] sm:$0xf]  ;;  %v3051_v58 = vor.u32 %v4448_v48, %v3048_v49 }
  0x34   :  { %1341 = vmatpush.bf16.msrb.mxu1 %v3751_v3  ;;  %v3735_v16 = vor.u32 %v4622_v9, %v3734_v7  ;;  %v3590_v18 = vld [vmem:[#allocation2 + $0x480] sm:$0xf]  ;;  %v4586_v19 = vld [vmem:[#allocation2 + $0x48c] sm:$0xf0]  ;;  %v3176_v56 = vld [vmem:[#allocation2 + $0x150] sm:$0xf0] }
  0x35   :  { %1369 = vmatpush.bf16.msrb.mxu3 %v3115_v4  ;;  %v3718_v20 = vld [vmem:[#allocation2 + $0x580] sm:$0xf]  ;;  %1292 = vmatmul.bf16.vlgmr.msra.gmra.mxu1 %v4935_v8  ;;  %v4618_v21 = vld [vmem:[#allocation2 + $0x58c] sm:$0xf0]  ;;  %v3591_v25 = vor.u32 %v4586_v19, %v3590_v18  ;;  %v4444_v0 = vld [vmem:[#allocation2 + $0x24] sm:$0xf]  ;;  %v3179_v4 = vor.u32 %v4480_v53, %v3176_v56 }
  0x36   :  { %1382 = vmatpush.bf16.msra.mxu2 %v3259_v63  ;;  %v3719_v28 = vor.u32 %v4618_v21, %v3718_v20  ;;  %v3574_v30 = vld [vmem:[#allocation2 + $0x460] sm:$0xf]  ;;  %v4582_v31 = vld [vmem:[#allocation2 + $0x46c] sm:$0xf0]  ;;  %v3032_v1 = vld [vmem:[#allocation2 + $0x30] sm:$0xf0] }
  0x37   :  { %1328 = vmatpush.bf16.msrb.mxu0 %v3607_v13  ;;  %v3702_v32 = vld [vmem:[#allocation2 + $0x560] sm:$0xf]  ;;  %v4614_v33 = vld [vmem:[#allocation2 + $0x56c] sm:$0xf0]  ;;  %v3575_v39 = vor.u32 %v4582_v31, %v3574_v30  ;;  %v4476_v2 = vld [vmem:[#allocation2 + $0x124] sm:$0xf]  ;;  %v3035_v11 = vor.u32 %v4444_v0, %v3032_v1 }
  0x38   :  { %1342 = vmatpush.bf16.msrb.mxu1 %v3735_v16  ;;  %v65_v36 = vld [vmem:[%s5159_s0 + $0x30] sm:$0xff]  ;;  %v3703_v42 = vor.u32 %v4614_v33, %v3702_v32  ;;  %v3558_v44 = vld [vmem:[#allocation2 + $0x440] sm:$0xf]  ;;  %v4440_v13 = vld [vmem:[#allocation2 + $0x4] sm:$0xf] }
  0x39   :  { %1370 = vmatpush.bf16.msrb.mxu3 %v3099_v17  ;;  %v4578_v45 = vld [vmem:[#allocation2 + $0x44c] sm:$0xf0]  ;;  %v3686_v46 = vld [vmem:[#allocation2 + $0x540] sm:$0xf]  ;;  %v4945_v50 = vpack.c.bf16 %v72_v37, %v65_v36  ;;  %v3160_v3 = vld [vmem:[#allocation2 + $0x130] sm:$0xf0] }
  0x3a   :  { %1383 = vmatpush.bf16.msra.mxu2 %v3243_v12  ;;  %v4610_v47 = vld [vmem:[#allocation2 + $0x54c] sm:$0xf0]  ;;  %v3559_v52 = vor.u32 %v4578_v45, %v3558_v44  ;;  %v3542_v59 = vld [vmem:[#allocation2 + $0x420] sm:$0xf]  ;;  %v3016_v14 = vld [vmem:[#allocation2 + $0x10] sm:$0xf0]  ;;  %v3163_v21 = vor.u32 %v4476_v2, %v3160_v3 }
  0x3b   :  { %1329 = vmatpush.bf16.msrb.mxu0 %v3591_v25  ;;  %v3687_v57 = vor.u32 %v4610_v47, %v3686_v46  ;;  %v4574_v61 = vld [vmem:[#allocation2 + $0x42c] sm:$0xf0]  ;;  %v3670_v62 = vld [vmem:[#allocation2 + $0x520] sm:$0xf]  ;;  %v4532_v15 = vld [vmem:[#allocation2 + $0x2e4] sm:$0xf]  ;;  %v3019_v27 = vor.u32 %v4440_v13, %v3016_v14 }
  0x3c   :  { %1343 = vmatpush.bf16.msrb.mxu1 %v3719_v28  ;;  %v4606_v63 = vld [vmem:[#allocation2 + $0x52c] sm:$0xf0]  ;;  %v3543_v5 = vor.u32 %v4574_v61, %v3542_v59  ;;  %v3526_v6 = vld [vmem:[#allocation2 + $0x400] sm:$0xf]  ;;  %v3384_v16 = vld [vmem:[#allocation2 + $0x2f0] sm:$0xf0] }
  0x3d   :  { %1371 = vmatpush.bf16.msrb.mxu3 %v3083_v29  ;;  %v4570_v7 = vld [vmem:[#allocation2 + $0x40c] sm:$0xf0]  ;;  %v3654_v9 = vld [vmem:[#allocation2 + $0x500] sm:$0xf]  ;;  %v3671_v10 = vor.u32 %v4606_v63, %v3670_v62  ;;  %v4564_v17 = vld [vmem:[#allocation2 + $0x3e4] sm:$0xf]  ;;  %v3387_v31 = vor.u32 %v4532_v15, %v3384_v16 }
  0x3e   :  { %1384 = vmatpush.bf16.msra.mxu2 %v3227_v24  ;;  %v4602_v12 = vld [vmem:[#allocation2 + $0x50c] sm:$0xf0]  ;;  %v3512_v18 = vld [vmem:[#allocation2 + $0x3f0] sm:$0xf0]  ;;  %v4596_v19 = vld [vmem:[#allocation2 + $0x4e4] sm:$0xf]  ;;  %v3527_v22 = vor.u32 %v4570_v7, %v3526_v6 }
  0x3f   :  { %1330 = vmatpush.bf16.msrb.mxu0 %v3575_v39  ;;  %v3640_v20 = vld [vmem:[#allocation2 + $0x4f0] sm:$0xf0]  ;;  %v63_v23 = vld [vmem:[%s5159_s0 + $0x20] sm:$0xff]  ;;  %v70_v24 = vld [vmem:[%s5159_s0 + $0x58] sm:$0xff]  ;;  %v3655_v26 = vor.u32 %v4602_v12, %v3654_v9  ;;  %v3515_v32 = vor.u32 %v4564_v17, %v3512_v18 }
  0x40   :  { %1344 = vmatpush.bf16.msrb.mxu1 %v3703_v42  ;;  %3796 = vmatmul.msk.bf16.vlgmr.msrb.gmra.mxu2 %vm1266_vm0, %v4945_v50  ;;  %v4472_v25 = vld [vmem:[#allocation2 + $0x104] sm:$0xf]  ;;  %v3144_v28 = vld [vmem:[#allocation2 + $0x110] sm:$0xf0]  ;;  %v64_v29 = vld [vmem:[%s5159_s0 + $0x28] sm:$0xff]  ;;  %v3643_v36 = vor.u32 %v4596_v19, %v3640_v20  ;;  %v4961_v37 = vpack.c.bf16 %v70_v24, %v63_v23 }
  0x41   :  { %1372 = vmatpush.bf16.msrb.mxu3 %v3067_v43  ;;  %v71_v30 = vld [vmem:[%s5159_s0 + $0x60] sm:$0xff]  ;;  %v3768_v34 = vld [vmem:[#allocation2 + $0x5f0] sm:$0xf0]  ;;  %v3147_v41 = vor.u32 %v4472_v25, %v3144_v28 }
  0x42   :  { %1385 = vmatpush.bf16.msra.mxu2 %v3211_v38  ;;  %v4628_v33 = vld [vmem:[#allocation2 + $0x5e4] sm:$0xf]  ;;  %v3368_v38 = vld [vmem:[#allocation2 + $0x2d0] sm:$0xf0]  ;;  %v4963_v42 = vpack.c.bf16 %v71_v30, %v64_v29 }
  0x43   :  { %1331 = vmatpush.bf16.msrb.mxu0 %v3559_v52  ;;  %v4528_v35 = vld [vmem:[#allocation2 + $0x2c4] sm:$0xf]  ;;  %v3496_v40 = vld [vmem:[#allocation2 + $0x3d0] sm:$0xf0]  ;;  %v3771_v45 = vor.u32 %v4628_v33, %v3768_v34 }
  0x44   :  { %1345 = vmatpush.bf16.msrb.mxu1 %v3687_v57  ;;  %v4560_v39 = vld [vmem:[#allocation2 + $0x3c4] sm:$0xf]  ;;  %v3624_v44 = vld [vmem:[#allocation2 + $0x4d0] sm:$0xf0]  ;;  %v3371_v46 = vor.u32 %v4528_v35, %v3368_v38 }
  0x45   :  { %1373 = vmatpush.bf16.msrb.mxu3 %v3051_v58  ;;  %v4592_v43 = vld [vmem:[#allocation2 + $0x4c4] sm:$0xf]  ;;  %v3499_v47 = vor.u32 %v4560_v39, %v3496_v40  ;;  %v3752_v49 = vld [vmem:[#allocation2 + $0x5d0] sm:$0xf0] }
  0x46   :  { %1386 = vmatpush.bf16.msra.mxu2 %v3195_v51  ;;  %v4624_v48 = vld [vmem:[#allocation2 + $0x5c4] sm:$0xf]  ;;  %v3627_v52 = vor.u32 %v4592_v43, %v3624_v44  ;;  %v3352_v53 = vld [vmem:[#allocation2 + $0x2b0] sm:$0xf0] }
  0x47   :  { %1332 = vmatpush.bf16.msrb.mxu0 %v3543_v5  ;;  %v4524_v51 = vld [vmem:[#allocation2 + $0x2a4] sm:$0xf]  ;;  %v3480_v57 = vld [vmem:[#allocation2 + $0x3b0] sm:$0xf0]  ;;  %v3755_v61 = vor.u32 %v4624_v48, %v3752_v49 }
  0x48   :  { %1346 = vmatpush.bf16.msrb.mxu1 %v3671_v10  ;;  %v4556_v56 = vld [vmem:[#allocation2 + $0x3a4] sm:$0xf]  ;;  %v3608_v59 = vld [vmem:[#allocation2 + $0x4b0] sm:$0xf0]  ;;  %v3355_v62 = vor.u32 %v4524_v51, %v3352_v53 }
  0x49   :  { %1374 = vmatpush.bf16.msrb.mxu3 %v3035_v11  ;;  %v4588_v58 = vld [vmem:[#allocation2 + $0x4a4] sm:$0xf]  ;;  %v3483_v63 = vor.u32 %v4556_v56, %v3480_v57  ;;  %v3736_v1 = vld [vmem:[#allocation2 + $0x5b0] sm:$0xf0] }
  0x4a   :  { %1387 = vmatpush.bf16.msra.mxu2 %v3179_v4  ;;  %v4620_v0 = vld [vmem:[#allocation2 + $0x5a4] sm:$0xf]  ;;  %v3611_v3 = vor.u32 %v4588_v58, %v3608_v59  ;;  %v3336_v4 = vld [vmem:[#allocation2 + $0x290] sm:$0xf0] }
  0x4b   :  { %1333 = vmatpush.bf16.msrb.mxu0 %v3527_v22  ;;  %v4520_v2 = vld [vmem:[#allocation2 + $0x284] sm:$0xf]  ;;  %v3464_v6 = vld [vmem:[#allocation2 + $0x390] sm:$0xf0]  ;;  %v3739_v10 = vor.u32 %v4620_v0, %v3736_v1  ;;  %v3134_v0 = vld [vmem:[#allocation2 + $0xe8] sm:$0xf] }
  0x4c   :  { %1347 = vmatpush.bf16.msrb.mxu1 %v3655_v26  ;;  %v4552_v5 = vld [vmem:[#allocation2 + $0x384] sm:$0xf]  ;;  %v3592_v9 = vld [vmem:[#allocation2 + $0x490] sm:$0xf0]  ;;  %v3339_v11 = vor.u32 %v4520_v2, %v3336_v4  ;;  %v4471_v1 = vld [vmem:[#allocation2 + $0xf4] sm:$0xf0] }
  0x4d   :  { %1375 = vmatpush.bf16.msrb.mxu3 %v3019_v27  ;;  %v4584_v7 = vld [vmem:[#allocation2 + $0x484] sm:$0xf]  ;;  %v3467_v12 = vor.u32 %v4552_v5, %v3464_v6  ;;  %v3720_v14 = vld [vmem:[#allocation2 + $0x590] sm:$0xf0]  ;;  %v3390_v5 = vld [vmem:[#allocation2 + $0x2e8] sm:$0xf] }
  0x4e   :  { %1388 = vmatpush.bf16.msra.mxu2 %v3163_v21  ;;  %1334 = vmatmul.bf16.vlgmr.msrb.gmra.mxu0 %v4961_v37  ;;  %v4616_v13 = vld [vmem:[#allocation2 + $0x584] sm:$0xf]  ;;  %v3595_v16 = vor.u32 %v4584_v7, %v3592_v9  ;;  %v3320_v17 = vld [vmem:[#allocation2 + $0x270] sm:$0xf0]  ;;  %v4535_v6 = vld [vmem:[#allocation2 + $0x2f4] sm:$0xf0] }
  0x4f   :  { %1396 = vmatpush.bf16.msra.mxu0 %v3387_v31  ;;  %1348 = vmatmul.bf16.vlgmr.msrb.gmra.mxu1 %v4963_v42  ;;  %v4516_v15 = vld [vmem:[#allocation2 + $0x264] sm:$0xf]  ;;  %v3448_v19 = vld [vmem:[#allocation2 + $0x370] sm:$0xf0]  ;;  %v3723_v22 = vor.u32 %v4616_v13, %v3720_v14  ;;  %v3135_v13 = vor.u32 %v4471_v1, %v3134_v0  ;;  %v3518_v14 = vld [vmem:[#allocation2 + $0x3e8] sm:$0xf] }
  0x50   :  { %1410 = vmatpush.bf16.msra.mxu1 %v3515_v32  ;;  %1376 = vmatmul.bf16.vlgmr.msrb.gmra.mxu3 %v4923_v55  ;;  %v4548_v18 = vld [vmem:[#allocation2 + $0x364] sm:$0xf]  ;;  %v3576_v21 = vld [vmem:[#allocation2 + $0x470] sm:$0xf0]  ;;  %v3323_v23 = vor.u32 %v4516_v15, %v3320_v17  ;;  %v4567_v15 = vld [vmem:[#allocation2 + $0x3f4] sm:$0xf0] }
  0x51   :  { %1424 = vmatpush.bf16.msra.mxu3 %v3643_v36  ;;  %v4580_v20 = vld [vmem:[#allocation2 + $0x464] sm:$0xf]  ;;  %v3451_v24 = vor.u32 %v4548_v18, %v3448_v19  ;;  %v3704_v26 = vld [vmem:[#allocation2 + $0x570] sm:$0xf0]  ;;  %v3262_v17 = vld [vmem:[#allocation2 + $0x1e8] sm:$0xf]  ;;  %v3391_v19 = vor.u32 %v4535_v6, %v3390_v5 }
  0x52   :  { %1389 = vmatpush.bf16.msra.mxu2 %v3147_v41  ;;  %v4612_v25 = vld [vmem:[#allocation2 + $0x564] sm:$0xf]  ;;  %v3579_v28 = vor.u32 %v4580_v20, %v3576_v21  ;;  %v3304_v29 = vld [vmem:[#allocation2 + $0x250] sm:$0xf0]  ;;  %v4503_v18 = vld [vmem:[#allocation2 + $0x1f4] sm:$0xf0] }
  0x53   :  { %1397 = vmatpush.bf16.msra.mxu0 %v3371_v46  ;;  %v4512_v27 = vld [vmem:[#allocation2 + $0x244] sm:$0xf]  ;;  %v3432_v31 = vld [vmem:[#allocation2 + $0x350] sm:$0xf0]  ;;  %v3707_v34 = vor.u32 %v4612_v25, %v3704_v26  ;;  %v3118_v21 = vld [vmem:[#allocation2 + $0xc8] sm:$0xf]  ;;  %v3263_v26 = vor.u32 %v4503_v18, %v3262_v17 }
  0x54   :  { %1411 = vmatpush.bf16.msra.mxu1 %v3499_v47  ;;  %v4544_v30 = vld [vmem:[#allocation2 + $0x344] sm:$0xf]  ;;  %v3560_v33 = vld [vmem:[#allocation2 + $0x450] sm:$0xf0]  ;;  %v3307_v35 = vor.u32 %v4512_v27, %v3304_v29  ;;  %v4531_v25 = vld [vmem:[#allocation2 + $0x2d4] sm:$0xf0] }
  0x55   :  { %1425 = vmatpush.bf16.msra.mxu3 %v3627_v52  ;;  %1390 = vmatmul.bf16.vlgmr.msra.gmra.mxu2 %v4935_v8  ;;  %v4576_v32 = vld [vmem:[#allocation2 + $0x444] sm:$0xf]  ;;  %v3435_v36 = vor.u32 %v4544_v30, %v3432_v31  ;;  %v3688_v39 = vld [vmem:[#allocation2 + $0x550] sm:$0xf0]  ;;  %v3502_v27 = vld [vmem:[#allocation2 + $0x3c8] sm:$0xf] }
  0x56   :  { %1438 = vmatpush.bf16.msrb.mxu2 %v3771_v45  ;;  %v4608_v38 = vld [vmem:[#allocation2 + $0x544] sm:$0xf]  ;;  %v3563_v41 = vor.u32 %v4576_v32, %v3560_v33  ;;  %v3288_v43 = vld [vmem:[#allocation2 + $0x230] sm:$0xf0]  ;;  %v3246_v30 = vld [vmem:[#allocation2 + $0x1c8] sm:$0xf] }
  0x57   :  { %1398 = vmatpush.bf16.msra.mxu0 %v3355_v62  ;;  %v4508_v40 = vld [vmem:[#allocation2 + $0x224] sm:$0xf]  ;;  %v3416_v45 = vld [vmem:[#allocation2 + $0x330] sm:$0xf0]  ;;  %v3691_v48 = vor.u32 %v4608_v38, %v3688_v39  ;;  %v4499_v31 = vld [vmem:[#allocation2 + $0x1d4] sm:$0xf0] }
  0x58   :  { %1412 = vmatpush.bf16.msra.mxu1 %v3483_v63  ;;  %v4540_v44 = vld [vmem:[#allocation2 + $0x324] sm:$0xf]  ;;  %v3544_v47 = vld [vmem:[#allocation2 + $0x430] sm:$0xf0]  ;;  %v3291_v52 = vor.u32 %v4508_v40, %v3288_v43  ;;  %v3102_v33 = vld [vmem:[#allocation2 + $0xa8] sm:$0xf]  ;;  %v3247_v39 = vor.u32 %v4499_v31, %v3246_v30 }
  0x59   :  { %1426 = vmatpush.bf16.msra.mxu3 %v3611_v3  ;;  %v4572_v46 = vld [vmem:[#allocation2 + $0x424] sm:$0xf]  ;;  %v3672_v51 = vld [vmem:[#allocation2 + $0x530] sm:$0xf0]  ;;  %v3419_v53 = vor.u32 %v4540_v44, %v3416_v45  ;;  %v4527_v38 = vld [vmem:[#allocation2 + $0x2b4] sm:$0xf0] }
  0x5a   :  { %1439 = vmatpush.bf16.msrb.mxu2 %v3755_v61  ;;  %v4604_v49 = vld [vmem:[#allocation2 + $0x524] sm:$0xf]  ;;  %v3272_v57 = vld [vmem:[#allocation2 + $0x210] sm:$0xf0]  ;;  %v3547_v59 = vor.u32 %v4572_v46, %v3544_v47  ;;  %v3486_v40 = vld [vmem:[#allocation2 + $0x3a8] sm:$0xf] }
  0x5b   :  { %1399 = vmatpush.bf16.msra.mxu0 %v3339_v11  ;;  %v4504_v56 = vld [vmem:[#allocation2 + $0x204] sm:$0xf]  ;;  %v3400_v61 = vld [vmem:[#allocation2 + $0x310] sm:$0xf0]  ;;  %v3675_v3 = vor.u32 %v4604_v49, %v3672_v51  ;;  %v3230_v44 = vld [vmem:[#allocation2 + $0x1a8] sm:$0xf] }
  0x5c   :  { %1413 = vmatpush.bf16.msra.mxu1 %v3467_v12  ;;  %v4536_v58 = vld [vmem:[#allocation2 + $0x304] sm:$0xf]  ;;  %v3528_v63 = vld [vmem:[#allocation2 + $0x410] sm:$0xf0]  ;;  %v3275_v7 = vor.u32 %v4504_v56, %v3272_v57  ;;  %v4495_v45 = vld [vmem:[#allocation2 + $0x1b4] sm:$0xf0] }
  0x5d   :  { %1427 = vmatpush.bf16.msra.mxu3 %v3595_v16  ;;  %v4568_v62 = vld [vmem:[#allocation2 + $0x404] sm:$0xf]  ;;  %v3784_v4 = vld [vmem:[#allocation2 + $0x610] sm:$0xf0]  ;;  %v3403_v9 = vor.u32 %v4536_v58, %v3400_v61  ;;  %v3086_v47 = vld [vmem:[#allocation2 + $0x88] sm:$0xf] }
  0x5e   :  { %1440 = vmatpush.bf16.msrb.mxu2 %v3739_v10  ;;  %v4632_v2 = vld [vmem:[#allocation2 + $0x604] sm:$0xf]  ;;  %v3656_v11 = vld [vmem:[#allocation2 + $0x510] sm:$0xf0]  ;;  %v3531_v12 = vor.u32 %v4568_v62, %v3528_v63  ;;  %v3342_v51 = vld [vmem:[#allocation2 + $0x288] sm:$0xf] }
  0x5f   :  { %1400 = vmatpush.bf16.msra.mxu0 %v3323_v23  ;;  %v4600_v10 = vld [vmem:[#allocation2 + $0x504] sm:$0xf]  ;;  %v3787_v16 = vor.u32 %v4632_v2, %v3784_v4  ;;  %v3519_v23 = vor.u32 %v4567_v15, %v3518_v14  ;;  %v3470_v56 = vld [vmem:[#allocation2 + $0x388] sm:$0xf]  ;;  %v4555_v57 = vld [vmem:[#allocation2 + $0x394] sm:$0xf0] }
  0x60   :  { %1414 = vmatpush.bf16.msra.mxu1 %v3451_v24  ;;  %v3659_v20 = vor.u32 %v4600_v10, %v3656_v11  ;;  %v3374_v24 = vld [vmem:[#allocation2 + $0x2c8] sm:$0xf]  ;;  %v4491_v61 = vld [vmem:[#allocation2 + $0x194] sm:$0xf0]  ;;  %v3471_v1 = vor.u32 %v4555_v57, %v3470_v56  ;;  %v4469_v56 = vld [vmem:[#allocation2 + $0xec] sm:$0xf] }
  0x61   :  { %1428 = vmatpush.bf16.msra.mxu3 %v3579_v28  ;;  %v4563_v28 = vld [vmem:[#allocation2 + $0x3d4] sm:$0xf0]  ;;  %v3375_v32 = vor.u32 %v4531_v25, %v3374_v24  ;;  %v3070_v63 = vld [vmem:[#allocation2 + $0x68] sm:$0xf]  ;;  %v3136_v57 = vld [vmem:[#allocation2 + $0xf8] sm:$0xf0] }
  0x62   :  { %1441 = vmatpush.bf16.msrb.mxu2 %v3723_v22  ;;  %v4467_v22 = vld [vmem:[#allocation2 + $0xd4] sm:$0xf0]  ;;  %v3326_v2 = vld [vmem:[#allocation2 + $0x268] sm:$0xf] }
  0x63   :  { %1401 = vmatpush.bf16.msra.mxu0 %v3307_v35  ;;  %v3119_v29 = vor.u32 %v4467_v22, %v3118_v21  ;;  %v3503_v35 = vor.u32 %v4563_v28, %v3502_v27  ;;  %v4455_v0 = vld [vmem:[#allocation2 + $0x74] sm:$0xf0]  ;;  %v3454_v5 = vld [vmem:[#allocation2 + $0x368] sm:$0xf] }
  0x64   :  { %1415 = vmatpush.bf16.msra.mxu1 %v3435_v36  ;;  %v3358_v36 = vld [vmem:[#allocation2 + $0x2a8] sm:$0xf]  ;;  %v4551_v6 = vld [vmem:[#allocation2 + $0x374] sm:$0xf0] }
  0x65   :  { %1429 = vmatpush.bf16.msra.mxu3 %v3563_v41  ;;  %v4559_v41 = vld [vmem:[#allocation2 + $0x3b4] sm:$0xf0]  ;;  %v3359_v46 = vor.u32 %v4527_v38, %v3358_v36  ;;  %v3455_v14 = vor.u32 %v4551_v6, %v3454_v5  ;;  %v3310_v15 = vld [vmem:[#allocation2 + $0x248] sm:$0xf]  ;;  %v3139_v6 = vor.u32 %v4469_v56, %v3136_v57 }
  0x66   :  { %1442 = vmatpush.bf16.msrb.mxu2 %v3707_v34  ;;  %v4463_v34 = vld [vmem:[#allocation2 + $0xb4] sm:$0xf0]  ;;  %v3487_v49 = vor.u32 %v4559_v41, %v3486_v40  ;;  %v3438_v18 = vld [vmem:[#allocation2 + $0x348] sm:$0xf] }
  0x67   :  { %1402 = vmatpush.bf16.msra.mxu0 %v3291_v52  ;;  %v3103_v43 = vor.u32 %v4463_v34, %v3102_v33  ;;  %v4523_v52 = vld [vmem:[#allocation2 + $0x294] sm:$0xf0]  ;;  %v3182_v21 = vld [vmem:[#allocation2 + $0x148] sm:$0xf] }
  0x68   :  { %1416 = vmatpush.bf16.msra.mxu1 %v3419_v53  ;;  %v3231_v53 = vor.u32 %v4495_v45, %v3230_v44  ;;  %v3343_v62 = vor.u32 %v4523_v52, %v3342_v51  ;;  %v4487_v10 = vld [vmem:[#allocation2 + $0x174] sm:$0xf0]  ;;  %v3038_v24 = vld [vmem:[#allocation2 + $0x28] sm:$0xf] }
  0x69   :  { %1430 = vmatpush.bf16.msra.mxu3 %v3547_v59  ;;  %v3214_v59 = vld [vmem:[#allocation2 + $0x188] sm:$0xf]  ;;  %v4483_v22 = vld [vmem:[#allocation2 + $0x154] sm:$0xf0] }
  0x6a   :  { %1443 = vmatpush.bf16.msrb.mxu2 %v3691_v48  ;;  %v4459_v48 = vld [vmem:[#allocation2 + $0x94] sm:$0xf0]  ;;  %v3215_v4 = vor.u32 %v4491_v61, %v3214_v59  ;;  %v3294_v27 = vld [vmem:[#allocation2 + $0x228] sm:$0xf] }
  0x6b   :  { %1403 = vmatpush.bf16.msra.mxu0 %v3275_v7  ;;  %v3087_v58 = vor.u32 %v4459_v48, %v3086_v47  ;;  %v3071_v7 = vor.u32 %v4455_v0, %v3070_v63  ;;  %v4447_v25 = vld [vmem:[#allocation2 + $0x34] sm:$0xf0]  ;;  %v3422_v30 = vld [vmem:[#allocation2 + $0x328] sm:$0xf] }
  0x6c   :  { %1417 = vmatpush.bf16.msra.mxu1 %v3403_v9  ;;  %v3198_v9 = vld [vmem:[#allocation2 + $0x168] sm:$0xf]  ;;  %v4511_v28 = vld [vmem:[#allocation2 + $0x234] sm:$0xf0] }
  0x6d   :  { %1431 = vmatpush.bf16.msra.mxu3 %v3531_v12  ;;  %v3054_v12 = vld [vmem:[#allocation2 + $0x48] sm:$0xf]  ;;  %v3199_v17 = vor.u32 %v4487_v10, %v3198_v9  ;;  %v4543_v31 = vld [vmem:[#allocation2 + $0x334] sm:$0xf0]  ;;  %v3295_v36 = vor.u32 %v4511_v28, %v3294_v27  ;;  %v4465_v9 = vld [vmem:[#allocation2 + $0xcc] sm:$0xf] }
  0x6e   :  { %1444 = vmatpush.bf16.msrb.mxu2 %v3675_v3  ;;  %1404 = vmatmul.bf16.vlgmr.msra.gmra.mxu0 %v4921_v54  ;;  %v4519_v3 = vld [vmem:[#allocation2 + $0x274] sm:$0xf0]  ;;  %v3166_v33 = vld [vmem:[#allocation2 + $0x128] sm:$0xf]  ;;  %v3423_v41 = vor.u32 %v4543_v31, %v3422_v30  ;;  %v3120_v10 = vld [vmem:[#allocation2 + $0xd8] sm:$0xf0] }
  0x6f   :  { %1494 = vmatpush.bf16.msrb.mxu0 %v3391_v19  ;;  %1418 = vmatmul.bf16.vlgmr.msra.gmra.mxu1 %v4925_v60  ;;  %v3327_v11 = vor.u32 %v4519_v3, %v3326_v2  ;;  %v4547_v19 = vld [vmem:[#allocation2 + $0x354] sm:$0xf0]  ;;  %v3278_v44 = vld [vmem:[#allocation2 + $0x208] sm:$0xf]  ;;  %v4501_v3 = vld [vmem:[#allocation2 + $0x1ec] sm:$0xf] }
  0x70   :  { %1466 = vmatpush.bf16.msrb.mxu1 %v3135_v13  ;;  %1432 = vmatmul.bf16.vlgmr.msra.gmra.mxu3 %v4961_v37  ;;  %v4451_v13 = vld [vmem:[#allocation2 + $0x54] sm:$0xf0]  ;;  %v3774_v61 = vld [vmem:[#allocation2 + $0x5e8] sm:$0xf]  ;;  %v3232_v30 = vld [vmem:[#allocation2 + $0x1b8] sm:$0xf0] }
  0x71   :  { %1459 = vmatpush.bf16.msrb.mxu3 %v3787_v16  ;;  %v4515_v16 = vld [vmem:[#allocation2 + $0x254] sm:$0xf0]  ;;  %v3630_v63 = vld [vmem:[#allocation2 + $0x4c8] sm:$0xf] }
  0x72   :  { %1445 = vmatpush.bf16.msrb.mxu2 %v3659_v20  ;;  %v3055_v20 = vor.u32 %v4451_v13, %v3054_v12  ;;  %v4479_v34 = vld [vmem:[#allocation2 + $0x134] sm:$0xf0]  ;;  %v3758_v13 = vld [vmem:[#allocation2 + $0x5c8] sm:$0xf] }
  0x73   :  { %1495 = vmatpush.bf16.msrb.mxu0 %v3375_v32  ;;  %v3039_v32 = vor.u32 %v4447_v25, %v3038_v24  ;;  %v4443_v38 = vld [vmem:[#allocation2 + $0x14] sm:$0xf0]  ;;  %v3167_v47 = vor.u32 %v4479_v34, %v3166_v33  ;;  %v3742_v25 = vld [vmem:[#allocation2 + $0x5a8] sm:$0xf]  ;;  %v4457_v33 = vld [vmem:[#allocation2 + $0x8c] sm:$0xf] }
  0x74   :  { %1467 = vmatpush.bf16.msrb.mxu1 %v3119_v29  ;;  %v3183_v29 = vor.u32 %v4483_v22, %v3182_v21  ;;  %v4599_v40 = vld [vmem:[#allocation2 + $0x4f4] sm:$0xf0]  ;;  %v4461_v21 = vld [vmem:[#allocation2 + $0xac] sm:$0xf]  ;;  %v3104_v22 = vld [vmem:[#allocation2 + $0xb8] sm:$0xf0] }
  0x75   :  { %1480 = vmatpush.bf16.msra.mxu3 %v3263_v26  ;;  %1446 = vmatmul.bf16.vlgmr.msrb.gmra.mxu2 %v4963_v42  ;;  %v3439_v26 = vor.u32 %v4547_v19, %v3438_v18  ;;  %v4507_v45 = vld [vmem:[#allocation2 + $0x214] sm:$0xf0]  ;;  %v3248_v18 = vld [vmem:[#allocation2 + $0x1d8] sm:$0xf0]  ;;  %v3123_v19 = vor.u32 %v4465_v9, %v3120_v10  ;;  %v3598_v27 = vld [vmem:[#allocation2 + $0x488] sm:$0xf]  ;;  %v3107_v31 = vor.u32 %v4461_v21, %v3104_v22 }
  0x76   :  { %1508 = vmatpush.bf16.msra.mxu2 %v3519_v23  ;;  %v3311_v23 = vor.u32 %v4515_v16, %v3310_v15  ;;  %v4539_v48 = vld [vmem:[#allocation2 + $0x314] sm:$0xf0]  ;;  %v3279_v59 = vor.u32 %v4507_v45, %v3278_v44  ;;  %v3614_v15 = vld [vmem:[#allocation2 + $0x4a8] sm:$0xf]  ;;  %v3088_v34 = vld [vmem:[#allocation2 + $0x98] sm:$0xf0] }
  0x77   :  { %1496 = vmatpush.bf16.msrb.mxu0 %v3359_v46  ;;  %v3406_v46 = vld [vmem:[#allocation2 + $0x308] sm:$0xf]  ;;  %v4635_v51 = vld [vmem:[#allocation2 + $0x614] sm:$0xf0]  ;;  %v3216_v44 = vld [vmem:[#allocation2 + $0x198] sm:$0xf0]  ;;  %v3091_v45 = vor.u32 %v4457_v33, %v3088_v34 }
  0x78   :  { %1468 = vmatpush.bf16.msrb.mxu1 %v3103_v43  ;;  %v3150_v43 = vld [vmem:[#allocation2 + $0x108] sm:$0xf]  ;;  %v3407_v0 = vor.u32 %v4539_v48, %v3406_v46  ;;  %v4591_v16 = vld [vmem:[#allocation2 + $0x4b4] sm:$0xf0]  ;;  %v3072_v48 = vld [vmem:[#allocation2 + $0x78] sm:$0xf0] }
  0x79   :  { %1481 = vmatpush.bf16.msra.mxu3 %v3247_v39  ;;  %v3646_v39 = vld [vmem:[#allocation2 + $0x4e8] sm:$0xf]  ;;  %v4587_v28 = vld [vmem:[#allocation2 + $0x494] sm:$0xf0]  ;;  %v3184_v9 = vld [vmem:[#allocation2 + $0x158] sm:$0xf0] }
  0x7a   :  { %1509 = vmatpush.bf16.msra.mxu2 %v3503_v35  ;;  %v3022_v35 = vld [vmem:[#allocation2 + $0x8] sm:$0xf]  ;;  %v4579_v57 = vld [vmem:[#allocation2 + $0x454] sm:$0xf0]  ;;  %v3168_v21 = vld [vmem:[#allocation2 + $0x138] sm:$0xf0] }
  0x7b   :  { %1497 = vmatpush.bf16.msrb.mxu0 %v3343_v62  ;;  %v3023_v52 = vor.u32 %v4443_v38, %v3022_v35  ;;  %v4631_v62 = vld [vmem:[#allocation2 + $0x5f4] sm:$0xf0]  ;;  %v3599_v35 = vor.u32 %v4587_v28, %v3598_v27  ;;  %v3726_v38 = vld [vmem:[#allocation2 + $0x588] sm:$0xf]  ;;  %v4441_v27 = vld [vmem:[#allocation2 + $0xc] sm:$0xf] }
  0x7c   :  { %1469 = vmatpush.bf16.msrb.mxu1 %v3087_v58  ;;  %v3647_v58 = vor.u32 %v4599_v40, %v3646_v39  ;;  %v4619_v39 = vld [vmem:[#allocation2 + $0x594] sm:$0xf0]  ;;  %v3582_v40 = vld [vmem:[#allocation2 + $0x468] sm:$0xf]  ;;  %v3024_v28 = vld [vmem:[#allocation2 + $0x18] sm:$0xf0] }
  0x7d   :  { %1482 = vmatpush.bf16.msra.mxu3 %v3231_v53  ;;  %v4475_v53 = vld [vmem:[#allocation2 + $0x114] sm:$0xf0]  ;;  %v3727_v46 = vor.u32 %v4619_v39, %v3726_v38  ;;  %v3566_v56 = vld [vmem:[#allocation2 + $0x448] sm:$0xf]  ;;  %v3520_v33 = vld [vmem:[#allocation2 + $0x3f8] sm:$0xf0]  ;;  %v3027_v39 = vor.u32 %v4441_v27, %v3024_v28 }
  0x7e   :  { %1510 = vmatpush.bf16.msra.mxu2 %v3487_v49  ;;  %v3790_v49 = vld [vmem:[#allocation2 + $0x608] sm:$0xf]  ;;  %v3151_v5 = vor.u32 %v4475_v53, %v3150_v43  ;;  %v4489_v43 = vld [vmem:[#allocation2 + $0x18c] sm:$0xf]  ;;  %v4615_v53 = vld [vmem:[#allocation2 + $0x574] sm:$0xf0] }
  0x7f   :  { %1498 = vmatpush.bf16.msrb.mxu0 %v3327_v11  ;;  %v3791_v2 = vor.u32 %v4635_v51, %v3790_v49  ;;  %v3219_v51 = vor.u32 %v4489_v43, %v3216_v44  ;;  %v4529_v38 = vld [vmem:[#allocation2 + $0x2cc] sm:$0xf]  ;;  %v3152_v43 = vld [vmem:[#allocation2 + $0x118] sm:$0xf0] }
  0x80   :  { %1470 = vmatpush.bf16.msrb.mxu1 %v3071_v7  ;;  %3797 = vmatmul.msk.bf16.vlgmr.msrb.gmra.mxu3 %vm1266_vm0, %v4945_v50  ;;  %v3775_v7 = vor.u32 %v4631_v62, %v3774_v61  ;;  %v3456_v28 = vld [vmem:[#allocation2 + $0x378] sm:$0xf0] }
  0x81   :  { %1483 = vmatpush.bf16.msra.mxu3 %v3215_v4  ;;  %v3264_v4 = vld [vmem:[#allocation2 + $0x1f8] sm:$0xf0] }
  0x82   :  { %1511 = vmatpush.bf16.msra.mxu2 %v3471_v1  ;;  %v4595_v1 = vld [vmem:[#allocation2 + $0x4d4] sm:$0xf0]  ;;  %v3267_v12 = vor.u32 %v4501_v3, %v3264_v4  ;;  %v3694_v3 = vld [vmem:[#allocation2 + $0x548] sm:$0xf] }
  0x83   :  { %1499 = vmatpush.bf16.msrb.mxu0 %v3311_v23  ;;  %v3631_v11 = vor.u32 %v4595_v1, %v3630_v63  ;;  %v3615_v23 = vor.u32 %v4591_v16, %v3614_v15  ;;  %v4449_v63 = vld [vmem:[#allocation2 + $0x4c] sm:$0xf]  ;;  %v3567_v1 = vor.u32 %v4579_v57, %v3566_v56  ;;  %v4611_v4 = vld [vmem:[#allocation2 + $0x554] sm:$0xf0]  ;;  %v3678_v16 = vld [vmem:[#allocation2 + $0x528] sm:$0xf] }
  0x84   :  { %1471 = vmatpush.bf16.msrb.mxu1 %v3055_v20  ;;  %v4593_v56 = vld [vmem:[#allocation2 + $0x4cc] sm:$0xf]  ;;  %v3632_v57 = vld [vmem:[#allocation2 + $0x4d8] sm:$0xf0] }
  0x85   :  { %1484 = vmatpush.bf16.msra.mxu3 %v3199_v17  ;;  %v4497_v17 = vld [vmem:[#allocation2 + $0x1cc] sm:$0xf] }
  0x86   :  { %1512 = vmatpush.bf16.msra.mxu2 %v3455_v14  ;;  %v4627_v14 = vld [vmem:[#allocation2 + $0x5d4] sm:$0xf0]  ;;  %v3251_v24 = vor.u32 %v4497_v17, %v3248_v18  ;;  %v3534_v18 = vld [vmem:[#allocation2 + $0x408] sm:$0xf] }
  0x87   :  { %1500 = vmatpush.bf16.msrb.mxu0 %v3295_v36  ;;  %v3759_v20 = vor.u32 %v4627_v14, %v3758_v13  ;;  %v3040_v13 = vld [vmem:[#allocation2 + $0x38] sm:$0xf0]  ;;  %v4607_v17 = vld [vmem:[#allocation2 + $0x534] sm:$0xf0] }
  0x88   :  { %1472 = vmatpush.bf16.msrb.mxu1 %v3039_v32 }
  0x89   :  { %1485 = vmatpush.bf16.msra.mxu3 %v3183_v29  ;;  %v4493_v29 = vld [vmem:[#allocation2 + $0x1ac] sm:$0xf] }
  0x8a   :  { %1513 = vmatpush.bf16.msra.mxu2 %v3439_v26  ;;  %v4623_v26 = vld [vmem:[#allocation2 + $0x5b4] sm:$0xf0]  ;;  %v3235_v36 = vor.u32 %v4493_v29, %v3232_v30 }
  0x8b   :  { %1501 = vmatpush.bf16.msrb.mxu0 %v3279_v59  ;;  %v3743_v32 = vor.u32 %v4623_v26, %v3742_v25  ;;  %v3200_v59 = vld [vmem:[#allocation2 + $0x178] sm:$0xf0]  ;;  %v3679_v25 = vor.u32 %v4607_v17, %v3678_v16  ;;  %v3662_v26 = vld [vmem:[#allocation2 + $0x508] sm:$0xf] }
  0x8c   :  { %1473 = vmatpush.bf16.msrb.mxu1 %v3023_v52  ;;  %v3710_v52 = vld [vmem:[#allocation2 + $0x568] sm:$0xf]  ;;  %v3472_v17 = vld [vmem:[#allocation2 + $0x398] sm:$0xf0] }
  0x8d   :  { %1486 = vmatpush.bf16.msra.mxu3 %v3167_v47  ;;  %v4453_v47 = vld [vmem:[#allocation2 + $0x6c] sm:$0xf]  ;;  %v3711_v62 = vor.u32 %v4615_v53, %v3710_v52  ;;  %v3504_v53 = vld [vmem:[#allocation2 + $0x3d8] sm:$0xf0] }
  0x8e   :  { %1514 = vmatpush.bf16.msra.mxu2 %v3423_v41  ;;  %1502 = vmatmul.bf16.vlgmr.msrb.gmra.mxu0 %v4921_v54  ;;  %v4583_v41 = vld [vmem:[#allocation2 + $0x474] sm:$0xf0]  ;;  %v3075_v61 = vor.u32 %v4453_v47, %v3072_v48 }
  0x8f   :  { %1557 = vmatpush.bf16.msra.mxu0 %v3791_v2  ;;  %1474 = vmatmul.bf16.vlgmr.msrb.gmra.mxu1 %v4923_v55  ;;  %v3583_v49 = vor.u32 %v4583_v41, %v3582_v40  ;;  %v3376_v40 = vld [vmem:[#allocation2 + $0x2d8] sm:$0xf0]  ;;  %v4473_v41 = vld [vmem:[#allocation2 + $0x10c] sm:$0xf] }
  0x90   :  { %1522 = vmatpush.bf16.msra.mxu1 %v3647_v58  ;;  %v4485_v58 = vld [vmem:[#allocation2 + $0x16c] sm:$0xf]  ;;  %v3155_v52 = vor.u32 %v4473_v41, %v3152_v43  ;;  %v3568_v43 = vld [vmem:[#allocation2 + $0x458] sm:$0xf0] }
  0x91   :  { %1487 = vmatpush.bf16.msra.mxu3 %v3151_v5  ;;  %v3203_v2 = vor.u32 %v4485_v58, %v3200_v59  ;;  %v3550_v5 = vld [vmem:[#allocation2 + $0x428] sm:$0xf]  ;;  %v4525_v59 = vld [vmem:[#allocation2 + $0x2ac] sm:$0xf] }
  0x92   :  { %1515 = vmatpush.bf16.msra.mxu2 %v3407_v0  ;;  %v3056_v0 = vld [vmem:[#allocation2 + $0x58] sm:$0xf0]  ;;  %v4577_v41 = vld [vmem:[#allocation2 + $0x44c] sm:$0xf] }
  0x93   :  { %1578 = vmatpush.bf16.msrb.mxu0 %v3267_v12  ;;  %v3059_v10 = vor.u32 %v4449_v63, %v3056_v0  ;;  %v4445_v12 = vld [vmem:[#allocation2 + $0x2c] sm:$0xf]  ;;  %v3760_v63 = vld [vmem:[#allocation2 + $0x5d8] sm:$0xf0] }
  0x94   :  { %1523 = vmatpush.bf16.msra.mxu1 %v3631_v11  ;;  %1488 = vmatmul.bf16.vlgmr.msra.gmra.mxu3 %v4935_v8  ;;  %v3695_v11 = vor.u32 %v4611_v4, %v3694_v3  ;;  %v3043_v22 = vor.u32 %v4445_v12, %v3040_v13  ;;  %v3488_v4 = vld [vmem:[#allocation2 + $0x3b8] sm:$0xf0] }
  0x95   :  { %1536 = vmatpush.bf16.msrb.mxu3 %v3775_v7  ;;  %1516 = vmatmul.bf16.vlgmr.msra.gmra.mxu2 %v4925_v60  ;;  %v4481_v7 = vld [vmem:[#allocation2 + $0x14c] sm:$0xf]  ;;  %v3744_v12 = vld [vmem:[#allocation2 + $0x5b8] sm:$0xf0] }
  0x96   :  { %1564 = vmatpush.bf16.msrb.mxu2 %v3139_v6  ;;  %v4575_v6 = vld [vmem:[#allocation2 + $0x434] sm:$0xf0]  ;;  %v3187_v15 = vor.u32 %v4481_v7, %v3184_v9  ;;  %v4521_v9 = vld [vmem:[#allocation2 + $0x28c] sm:$0xf] }
  0x97   :  { %1579 = vmatpush.bf16.msrb.mxu0 %v3251_v24  ;;  %v3551_v14 = vor.u32 %v4575_v6, %v3550_v5  ;;  %v3392_v24 = vld [vmem:[#allocation2 + $0x2f8] sm:$0xf0]  ;;  %v4589_v5 = vld [vmem:[#allocation2 + $0x4ac] sm:$0xf] }
  0x98   :  { %1524 = vmatpush.bf16.msra.mxu1 %v3615_v23  ;;  %v4533_v23 = vld [vmem:[#allocation2 + $0x2ec] sm:$0xf]  ;;  %v3616_v6 = vld [vmem:[#allocation2 + $0x4b8] sm:$0xf0] }
  0x99   :  { %1537 = vmatpush.bf16.msrb.mxu3 %v3759_v20  ;;  %v4477_v20 = vld [vmem:[#allocation2 + $0x12c] sm:$0xf]  ;;  %v3395_v34 = vor.u32 %v4533_v23, %v3392_v24 }
  0x9a   :  { %1565 = vmatpush.bf16.msrb.mxu2 %v3123_v19  ;;  %v4571_v19 = vld [vmem:[#allocation2 + $0x414] sm:$0xf0]  ;;  %v3171_v30 = vor.u32 %v4477_v20, %v3168_v21  ;;  %v4517_v21 = vld [vmem:[#allocation2 + $0x26c] sm:$0xf] }
  0x9b   :  { %1580 = vmatpush.bf16.msrb.mxu0 %v3235_v36  ;;  %v3535_v29 = vor.u32 %v4571_v19, %v3534_v18  ;;  %v3648_v36 = vld [vmem:[#allocation2 + $0x4f8] sm:$0xf0]  ;;  %v4585_v18 = vld [vmem:[#allocation2 + $0x48c] sm:$0xf] }
  0x9c   :  { %1525 = vmatpush.bf16.msra.mxu1 %v3599_v35  ;;  %v4597_v35 = vld [vmem:[#allocation2 + $0x4ec] sm:$0xf]  ;;  %v3600_v19 = vld [vmem:[#allocation2 + $0x498] sm:$0xf0] }
  0x9d   :  { %1538 = vmatpush.bf16.msrb.mxu3 %v3743_v32  ;;  %v4565_v32 = vld [vmem:[#allocation2 + $0x3ec] sm:$0xf]  ;;  %v3651_v48 = vor.u32 %v4597_v35, %v3648_v36 }
  0x9e   :  { %1566 = vmatpush.bf16.msrb.mxu2 %v3107_v31  ;;  %3798 = vmatmul.msk.bf16.vlgmr.msra.gmra.mxu0 %vm1266_vm0, %v4945_v50  ;;  %v4603_v31 = vld [vmem:[#allocation2 + $0x514] sm:$0xf0]  ;;  %v3523_v47 = vor.u32 %v4565_v32, %v3520_v33  ;;  %v4617_v23 = vld [vmem:[#allocation2 + $0x58c] sm:$0xf] }
  0x9f   :  { %1581 = vmatpush.bf16.msrb.mxu0 %v3219_v51  ;;  %v3663_v44 = vor.u32 %v4603_v31, %v3662_v26  ;;  %v3379_v51 = vor.u32 %v4529_v38, %v3376_v40  ;;  %v4549_v26 = vld [vmem:[#allocation2 + $0x36c] sm:$0xf]  ;;  %v3440_v40 = vld [vmem:[#allocation2 + $0x358] sm:$0xf0] }
  0xa0   :  { %1526 = vmatpush.bf16.msra.mxu1 %v3583_v49  ;;  %v4561_v49 = vld [vmem:[#allocation2 + $0x3cc] sm:$0xf]  ;;  %v3459_v35 = vor.u32 %v4549_v26, %v3456_v28  ;;  %v4662_v28 = vld [vmem:[#allocation4 + $0xcc] sm:$0xf0] }
  0xa1   :  { %1539 = vmatpush.bf16.msrb.mxu3 %v3727_v46  ;;  %v3776_v46 = vld [vmem:[#allocation2 + $0x5f8] sm:$0xf0]  ;;  %v3507_v0 = vor.u32 %v4561_v49, %v3504_v53  ;;  %v4513_v32 = vld [vmem:[#allocation2 + $0x24c] sm:$0xf] }
  0xa2   :  { %1567 = vmatpush.bf16.msrb.mxu2 %v3091_v45  ;;  %v4629_v45 = vld [vmem:[#allocation2 + $0x5ec] sm:$0xf] }
  0xa3   :  { %1582 = vmatpush.bf16.msrb.mxu0 %v3203_v2  ;;  %v3779_v58 = vor.u32 %v4629_v45, %v3776_v46  ;;  %v4557_v2 = vld [vmem:[#allocation2 + $0x3ac] sm:$0xf]  ;;  %v3296_v46 = vld [vmem:[#allocation2 + $0x238] sm:$0xf0] }
  0xa4   :  { %1527 = vmatpush.bf16.msra.mxu1 %v3567_v1  ;;  %v3635_v1 = vor.u32 %v4593_v56, %v3632_v57  ;;  %v3491_v13 = vor.u32 %v4557_v2, %v3488_v4  ;;  %v4613_v33 = vld [vmem:[#allocation2 + $0x56c] sm:$0xf]  ;;  %v3424_v57 = vld [vmem:[#allocation2 + $0x338] sm:$0xf0] }
  0xa5   :  { %1540 = vmatpush.bf16.msrb.mxu3 %v3711_v62  ;;  %v4625_v62 = vld [vmem:[#allocation2 + $0x5cc] sm:$0xf]  ;;  %v3680_v2 = vld [vmem:[#allocation2 + $0x538] sm:$0xf0] }
  0xa6   :  { %1568 = vmatpush.bf16.msrb.mxu2 %v3075_v61  ;;  %v3360_v61 = vld [vmem:[#allocation2 + $0x2b8] sm:$0xf0]  ;;  %v3763_v7 = vor.u32 %v4625_v62, %v3760_v63  ;;  %v4545_v38 = vld [vmem:[#allocation2 + $0x34c] sm:$0xf] }
  0xa7   :  { %1583 = vmatpush.bf16.msrb.mxu0 %v3187_v15  ;;  %v3363_v3 = vor.u32 %v4525_v59, %v3360_v61  ;;  %v4553_v15 = vld [vmem:[#allocation2 + $0x38c] sm:$0xf]  ;;  %v3443_v49 = vor.u32 %v4545_v38, %v3440_v40  ;;  %v3552_v59 = vld [vmem:[#allocation2 + $0x438] sm:$0xf0]  ;;  %v3882_v38 = vld [vmem:[#allocation4 + $0xa0] sm:$0xf] }
  0xa8   :  { %1528 = vmatpush.bf16.msra.mxu1 %v3551_v14  ;;  %v3619_v14 = vor.u32 %v4589_v5, %v3616_v6  ;;  %v3475_v24 = vor.u32 %v4553_v15, %v3472_v17  ;;  %v4509_v45 = vld [vmem:[#allocation2 + $0x22c] sm:$0xf]  ;;  %v3792_v4 = vld [vmem:[#allocation2 + $0x618] sm:$0xf0]  ;;  %v4666_v17 = vld [vmem:[#allocation4 + $0xec] sm:$0xf0] }
  0xa9   :  { %1541 = vmatpush.bf16.msrb.mxu3 %v3695_v11  ;;  %v4621_v11 = vld [vmem:[#allocation2 + $0x5ac] sm:$0xf]  ;;  %v3299_v56 = vor.u32 %v4509_v45, %v3296_v46 }
  0xaa   :  { %1569 = vmatpush.bf16.msrb.mxu2 %v3059_v10  ;;  %v3344_v10 = vld [vmem:[#allocation2 + $0x298] sm:$0xf0]  ;;  %v3747_v20 = vor.u32 %v4621_v11, %v3744_v12  ;;  %v4505_v63 = vld [vmem:[#allocation2 + $0x20c] sm:$0xf] }
  0xab   :  { %1584 = vmatpush.bf16.msrb.mxu0 %v3171_v30  ;;  %v3347_v16 = vor.u32 %v4521_v9, %v3344_v10  ;;  %v3584_v30 = vld [vmem:[#allocation2 + $0x478] sm:$0xf0]  ;;  %v4990_v9 = vld [vmem:[%s5161_s2] sm:$0xf] }
  0xac   :  { %1529 = vmatpush.bf16.msra.mxu1 %v3535_v29  ;;  %v4581_v29 = vld [vmem:[#allocation2 + $0x46c] sm:$0xf]  ;;  %v3408_v12 = vld [vmem:[#allocation2 + $0x318] sm:$0xf0] }
  0xad   :  { %1542 = vmatpush.bf16.msrb.mxu3 %v3679_v25  ;;  %v3603_v25 = vor.u32 %v4585_v18, %v3600_v19  ;;  %v3587_v36 = vor.u32 %v4581_v29, %v3584_v30  ;;  %v4601_v18 = vld [vmem:[#allocation2 + $0x50c] sm:$0xf] }
  0xae   :  { %1570 = vmatpush.bf16.msrb.mxu2 %v3043_v22  ;;  %v3328_v22 = vld [vmem:[#allocation2 + $0x278] sm:$0xf0]  ;;  %v1279_v53 = vpop.f32.mrf.mxu0 }
  0xaf   :  { %1530 = vmatmul.bf16.vlgmr.msra.gmra.mxu1 %v4961_v37  ;;  %1585 = vmatpush.bf16.msrb.mxu0 %v3155_v52  ;;  %v3331_v27 = vor.u32 %v4517_v21, %v3328_v22  ;;  %v4541_v52 = vld [vmem:[#allocation2 + $0x32c] sm:$0xf]  ;;  %v4042_v21 = vld [vmem:[#allocation4 + $0x1e0] sm:$0xf]  ;;  %v4698_v22 = vld [vmem:[#allocation4 + $0x1ec] sm:$0xf0] }
  0xb0   :  { %1592 = vmatpush.bf16.msrb.mxu1 %v3395_v34  ;;  %v3712_v34 = vld [vmem:[#allocation2 + $0x578] sm:$0xf0]  ;;  %v3427_v5 = vor.u32 %v4541_v52, %v3424_v57  ;;  %v4043_v29 = vor.u32 %v4698_v22, %v4042_v21  ;;  %v3994_v52 = vld [vmem:[#allocation4 + $0x180] sm:$0xf]  ;;  %v4674_v21 = vld [vmem:[#allocation4 + $0x12c] sm:$0xf0] }
  0xb1   :  { %1543 = vmatpush.bf16.msrb.mxu3 %v3663_v44  ;;  %v3715_v44 = vor.u32 %v4613_v33, %v3712_v34 }
  0xb2   :  { %1571 = vmatpush.bf16.msrb.mxu2 %v3027_v39  ;;  %1586 = vmatmul.bf16.vlgmr.msrb.gmra.mxu0 %v4935_v8  ;;  %v3312_v8 = vld [vmem:[#allocation2 + $0x258] sm:$0xf0]  ;;  %v4985_v61 = vpop.f32.mrf.mxu1 }
  0xb3   :  { %1634 = vmatpush.bf16.msra.mxu0 %v3779_v58  ;;  %v3315_v39 = vor.u32 %v4513_v32, %v3312_v8  ;;  %v4573_v58 = vld [vmem:[#allocation2 + $0x42c] sm:$0xf]  ;;  %v4992_v10 = vpop.f32.mrf.mxu2  ;;  %v4694_v32 = vld [vmem:[#allocation4 + $0x1cc] sm:$0xf0] }
  0xb4   :  { %1593 = vmatpush.bf16.msrb.mxu1 %v3379_v51  ;;  %1544 = vmatmul.bf16.vlgmr.msrb.gmra.mxu3 %v4963_v42  ;;  %v3571_v51 = vor.u32 %v4577_v41, %v3568_v43  ;;  %v3555_v6 = vor.u32 %v4573_v58, %v3552_v59  ;;  %v4010_v43 = vld [vmem:[#allocation4 + $0x1a0] sm:$0xf]  ;;  %v4650_v59 = vld [vmem:[#allocation4 + $0x6c] sm:$0xf0] }
  0xb5   :  { %1606 = vmatpush.bf16.msra.mxu3 %v3523_v47  ;;  %1572 = vmatmul.bf16.vlgmr.msrb.gmra.mxu2 %v4923_v55  ;;  %v3728_v55 = vld [vmem:[#allocation2 + $0x598] sm:$0xf0]  ;;  %v4609_v47 = vld [vmem:[#allocation2 + $0x54c] sm:$0xf]  ;;  %v1321_v33 = vpop.f32.mrf.mxu3  ;;  %v3850_v58 = vld [vmem:[#allocation4 + $0x60] sm:$0xf] }
  0xb6   :  { %1620 = vmatpush.bf16.msra.mxu2 %v3651_v48  ;;  %v3731_v31 = vor.u32 %v4617_v23, %v3728_v55  ;;  %v3696_v48 = vld [vmem:[#allocation2 + $0x558] sm:$0xf0]  ;;  %v1281_v30 = vpop.f32.mrf.mxu0 }
  0xb7   :  { %1635 = vmatpush.bf16.msra.mxu0 %v3763_v7  ;;  %v3699_v62 = vor.u32 %v4609_v47, %v3696_v48  ;;  %v4537_v7 = vld [vmem:[#allocation2 + $0x30c] sm:$0xf]  ;;  %v3866_v47 = vld [vmem:[#allocation4 + $0x80] sm:$0xf]  ;;  %v4654_v48 = vld [vmem:[#allocation4 + $0x8c] sm:$0xf0] }
  0xb8   :  { %1594 = vmatpush.bf16.msrb.mxu1 %v3363_v3  ;;  %v4633_v3 = vld [vmem:[#allocation2 + $0x60c] sm:$0xf]  ;;  %v3411_v23 = vor.u32 %v4537_v7, %v3408_v12 }
  0xb9   :  { %1607 = vmatpush.bf16.msra.mxu3 %v3507_v0  ;;  %v3280_v0 = vld [vmem:[#allocation2 + $0x218] sm:$0xf0]  ;;  %v3795_v19 = vor.u32 %v4633_v3, %v3792_v4  ;;  %v3834_v4 = vld [vmem:[#allocation4 + $0x40] sm:$0xf] }
  0xba   :  { %1621 = vmatpush.bf16.msra.mxu2 %v3635_v1  ;;  %v4605_v1 = vld [vmem:[#allocation2 + $0x52c] sm:$0xf]  ;;  %v3283_v11 = vor.u32 %v4505_v63, %v3280_v0  ;;  %v1295_v8 = vpop.f32.mrf.mxu1  ;;  %v3978_v63 = vld [vmem:[#allocation4 + $0x160] sm:$0xf]  ;;  %v4682_v0 = vld [vmem:[#allocation4 + $0x16c] sm:$0xf0] }
  0xbb   :  { %1636 = vmatpush.bf16.msra.mxu0 %v3747_v20  ;;  %v3683_v15 = vor.u32 %v4605_v1, %v3680_v2  ;;  %v3664_v20 = vld [vmem:[#allocation2 + $0x518] sm:$0xf0]  ;;  %v1309_v41 = vpop.f32.mrf.mxu2  ;;  %v3851_v1 = vor.u32 %v4650_v59, %v3850_v58  ;;  %v4726_v58 = vld [vmem:[#allocation4 + $0x2cc] sm:$0xf0]  ;;  %v4652_v59 = vld [vmem:[#allocation4 + $0x84] sm:$0xf] }
  0xbc   :  { %1595 = vmatpush.bf16.msrb.mxu1 %v3347_v16  ;;  %v3914_v16 = vld [vmem:[#allocation4 + $0xe0] sm:$0xf]  ;;  %v3667_v26 = vor.u32 %v4601_v18, %v3664_v20  ;;  %v4642_v18 = vld [vmem:[#allocation4 + $0x2c] sm:$0xf0] }
  0xbd   :  { %1608 = vmatpush.bf16.msra.mxu3 %v3491_v13  ;;  %v4569_v13 = vld [vmem:[#allocation2 + $0x40c] sm:$0xf]  ;;  %v3946_v20 = vld [vmem:[#allocation4 + $0x120] sm:$0xf] }
  0xbe   :  { %1622 = vmatpush.bf16.msra.mxu2 %v3619_v14  ;;  %v3536_v14 = vld [vmem:[#allocation2 + $0x418] sm:$0xf0] }
  0xbf   :  { %1637 = vmatpush.bf16.msra.mxu0 %v3731_v31  ;;  %v3539_v55 = vor.u32 %v4569_v13, %v3536_v14  ;;  %v4026_v31 = vld [vmem:[#allocation4 + $0x1c0] sm:$0xf] }
  0xc0   :  { %1596 = vmatpush.bf16.msrb.mxu1 %v3331_v27  ;;  %v3898_v27 = vld [vmem:[#allocation4 + $0xc0] sm:$0xf]  ;;  %v4027_v40 = vor.u32 %v4694_v32, %v4026_v31  ;;  %v4696_v32 = vld [vmem:[#allocation4 + $0x1e4] sm:$0xf] }
  0xc1   :  { %1609 = vmatpush.bf16.msra.mxu3 %v3475_v24  ;;  %v3915_v24 = vor.u32 %v4666_v17, %v3914_v16  ;;  %v3899_v34 = vor.u32 %v4662_v28, %v3898_v27  ;;  %v3818_v17 = vld [vmem:[#allocation4 + $0x20] sm:$0xf]  ;;  %v4664_v27 = vld [vmem:[#allocation4 + $0xe4] sm:$0xf]  ;;  %v3916_v28 = vld [vmem:[#allocation4 + $0xf0] sm:$0xf0] }
  0xc2   :  { %1623 = vmatpush.bf16.msra.mxu2 %v3603_v25  ;;  %v278_v25 = vperm.slane %v4990_v9, 0 }
  0xc3   :  { %1638 = vmatpush.bf16.msra.mxu0 %v3715_v44  ;;  %v4690_v44 = vld [vmem:[#allocation4 + $0x1ac] sm:$0xf0] }
  0xc4   :  { %1597 = vmatpush.bf16.msrb.mxu1 %v3315_v39  ;;  %v4658_v39 = vld [vmem:[#allocation4 + $0xac] sm:$0xf0] }
  0xc5   :  { %1610 = vmatpush.bf16.msra.mxu3 %v3459_v35  ;;  %v1280_v35 = vadd.f32 %v1279_v53, %v278_v25  ;;  %v4686_v53 = vld [vmem:[#allocation4 + $0x18c] sm:$0xf0] }
  0xc6   :  { %1624 = vmatpush.bf16.msra.mxu2 %v3587_v36  ;;  %v1282_v36 = vadd.f32 %v1281_v30, %v278_v25  ;;  %v3802_v25 = vld [vmem:[#allocation4] sm:$0xf]  ;;  %v4670_v30 = vld [vmem:[#allocation4 + $0x10c] sm:$0xf0] }
  0xc7   :  { %1639 = vmatpush.bf16.msra.mxu0 %v3699_v62  ;;  %v1294_v45 = vadd.f32 %v4985_v61, %v1280_v35  ;;  %v1323_v62 = vpop.f32.mrf.mxu3  ;;  %v1363_v61 = vpop.f32.mrf.mxu2 }
  0xc8   :  { %1598 = vmatpush.bf16.msrb.mxu1 %v3299_v56  ;;  %v1296_v46 = vadd.f32 %v1295_v8, %v1282_v36  ;;  %v4044_v8 = vld [vmem:[#allocation4 + $0x1f0] sm:$0xf0]  ;;  %v3919_v36 = vor.u32 %v4664_v27, %v3916_v28  ;;  %v4106_v27 = vld [vmem:[#allocation4 + $0x260] sm:$0xf]  ;;  %v4640_v28 = vld [vmem:[#allocation4 + $0x24] sm:$0xf] }
  0xc9   :  { %1611 = vmatpush.bf16.msra.mxu3 %v3443_v49  ;;  %v4011_v49 = vor.u32 %v4690_v44, %v4010_v43  ;;  %v1308_v57 = vadd.f32 %v4992_v10, %v1294_v45  ;;  %v4678_v10 = vld [vmem:[#allocation4 + $0x14c] sm:$0xf0]  ;;  %v4692_v44 = vld [vmem:[#allocation4 + $0x1c4] sm:$0xf] }
  0xca   :  { %1625 = vmatpush.bf16.msra.mxu2 %v3571_v51 }
  0xcb   :  { %1640 = vmatpush.bf16.msra.mxu0 %v3683_v15  ;;  %v1335_v51 = vpop.f32.mrf.mxu0  ;;  %v1322_v2 = vadd.f32 %v1321_v33, %v1308_v57 }
  0xcc   :  { %1599 = vmatpush.bf16.msrb.mxu1 %v3283_v11  ;;  %v1349_v56 = vpop.f32.mrf.mxu1  ;;  %v3962_v11 = vld [vmem:[#allocation4 + $0x140] sm:$0xf] }
  0xcd   :  { %1612 = vmatpush.bf16.msra.mxu3 %v3427_v5  ;;  %v4646_v5 = vld [vmem:[#allocation4 + $0x4c] sm:$0xf0]  ;;  %v1336_v12 = vadd.f32 %v1335_v51, %v1322_v2  ;;  %v3884_v51 = vld [vmem:[#allocation4 + $0xb0] sm:$0xf0] }
  0xce   :  { %1626 = vmatpush.bf16.msra.mxu2 %v3555_v6  ;;  %v3979_v6 = vor.u32 %v4682_v0, %v3978_v63  ;;  %v3835_v15 = vor.u32 %v4646_v5, %v3834_v4  ;;  %v3996_v2 = vld [vmem:[#allocation4 + $0x190] sm:$0xf0]  ;;  %v4138_v4 = vld [vmem:[#allocation4 + $0x2a0] sm:$0xf]  ;;  %v4722_v5 = vld [vmem:[#allocation4 + $0x2ac] sm:$0xf0] }
  0xcf   :  { %1600 = vmatmul.bf16.vlgmr.msrb.gmra.mxu1 %v4921_v54  ;;  %1641 = vmatpush.bf16.msra.mxu0 %v3667_v26  ;;  %v3883_v54 = vor.u32 %v4658_v39, %v3882_v38  ;;  %v1350_v22 = vadd.f32 %v1349_v56, %v1336_v12  ;;  %v4638_v26 = vld [vmem:[#allocation4 + $0xc] sm:$0xf0]  ;;  %v4660_v39 = vld [vmem:[#allocation4 + $0xc4] sm:$0xf] }
  0xd0   :  { %1655 = vmatpush.bf16.msra.mxu1 %v3795_v19  ;;  %v3963_v19 = vor.u32 %v4678_v10, %v3962_v11  ;;  %v3803_v33 = vor.u32 %v4638_v26, %v3802_v25  ;;  %v4688_v56 = vld [vmem:[#allocation4 + $0x1a4] sm:$0xf]  ;;  %v4139_v10 = vor.u32 %v4722_v5, %v4138_v4 }
  0xd1   :  { %1613 = vmatpush.bf16.msra.mxu3 %v3411_v23  ;;  %v1365_v23 = vpop.f32.mrf.mxu2  ;;  %v1364_v31 = vadd.f32 %v1363_v61, %v1350_v22  ;;  %v4680_v12 = vld [vmem:[#allocation4 + $0x164] sm:$0xf] }
  0xd2   :  { %1627 = vmatpush.bf16.msra.mxu2 %v3539_v55  ;;  %1642 = vmatmul.bf16.vlgmr.msra.gmra.mxu0 %v4963_v42  ;;  %v3995_v42 = vor.u32 %v4686_v53, %v3994_v52  ;;  %v3819_v55 = vor.u32 %v4642_v18, %v3818_v17  ;;  %v3836_v17 = vld [vmem:[#allocation4 + $0x50] sm:$0xf0]  ;;  %v4676_v22 = vld [vmem:[#allocation4 + $0x144] sm:$0xf] }
  0xd3   :  { %v1337_v7 = vpop.f32.mrf.mxu0  ;;  %v5003_v35 = vpop.f32.mrf.mxu3  ;;  %v1662_v43 = vmax.f32 %v1364_v31, 0.0 }
  0xd4   :  { %2466 = vmatpush.bf16.msrb.mxu1 %v4043_v29  ;;  %1614 = vmatmul.bf16.vlgmr.msra.gmra.mxu3 %v4925_v60  ;;  %v3867_v60 = vor.u32 %v4654_v48, %v3866_v47  ;;  %v1351_v14 = vpop.f32.mrf.mxu1  ;;  %v3930_v29 = vld [vmem:[#allocation4 + $0x100] sm:$0xf]  ;;  %v4730_v48 = vld [vmem:[#allocation4 + $0x2ec] sm:$0xf0] }
  0xd5   :  { %2452 = vmatpush.bf16.msrb.mxu3 %v3915_v24  ;;  %1628 = vmatmul.bf16.vlgmr.msra.gmra.mxu2 %v4961_v37  ;;  %v1310_v37 = vadd.f32 %v1309_v41, %v1296_v46  ;;  %v3931_v38 = vor.u32 %v4670_v30, %v3930_v29  ;;  %v4047_v41 = vor.u32 %v4696_v32, %v4044_v8  ;;  %v4170_v47 = vld [vmem:[#allocation4 + $0x2e0] sm:$0xf]  ;;  %v3820_v29 = vld [vmem:[#allocation4 + $0x30] sm:$0xf0]  ;;  %v4672_v8 = vld [vmem:[#allocation4 + $0x124] sm:$0xf] }
  0xd6   :  { %v4171_v53 = vor.u32 %v4730_v48, %v4170_v47  ;;  %v4667_v48 = vld [vmem:[#allocation4 + $0xf4] sm:$0xf0] }
  0xd7   :  { %v1324_v3 = vadd.f32 %v1323_v62, %v1310_v37  ;;  %v4154_v37 = vld [vmem:[#allocation4 + $0x2c0] sm:$0xf] }
  0xd8   :  { %2467 = vmatpush.bf16.msrb.mxu1 %v4027_v40  ;;  %v3900_v40 = vld [vmem:[#allocation4 + $0xd0] sm:$0xf0]  ;;  %2480 = vmatpush.bf16.msrb.mxu2 %v4171_v53  ;;  %v4155_v61 = vor.u32 %v4726_v58, %v4154_v37  ;;  %v4706_v37 = vld [vmem:[#allocation4 + $0x22c] sm:$0xf0] }
  0xd9   :  { %2453 = vmatpush.bf16.msrb.mxu3 %v3899_v34  ;;  %v1338_v13 = vadd.f32 %v1337_v7, %v1324_v3  ;;  %v3903_v46 = vor.u32 %v4660_v39, %v3900_v40  ;;  %v1391_v63 = vpop.f32.mrf.mxu2  ;;  %v3852_v7 = vld [vmem:[#allocation4 + $0x70] sm:$0xf0]  ;;  %v4090_v39 = vld [vmem:[#allocation4 + $0x240] sm:$0xf]  ;;  %v4710_v40 = vld [vmem:[#allocation4 + $0x24c] sm:$0xf0] }
  0xdb   :  { %v1352_v16 = vadd.f32 %v1351_v14, %v1338_v13  ;;  %v1379_v0 = vpop.f32.mrf.mxu3  ;;  %v3980_v13 = vld [vmem:[#allocation4 + $0x170] sm:$0xf0] }
  0xdc   :  { %2468 = vmatpush.bf16.msrb.mxu1 %v4011_v49  ;;  %v4656_v49 = vld [vmem:[#allocation4 + $0xa4] sm:$0xf]  ;;  %2481 = vmatpush.bf16.msrb.mxu2 %v4155_v61  ;;  %v3983_v18 = vor.u32 %v4680_v12, %v3980_v13  ;;  %v3906_v61 = vld [vmem:[#allocation4 + $0xc8] sm:$0xf]  ;;  %v4659_v13 = vld [vmem:[#allocation4 + $0xb4] sm:$0xf0] }
  0xdd   :  { %2454 = vmatpush.bf16.msrb.mxu3 %v3883_v54  ;;  %v1366_v24 = vadd.f32 %v1365_v23, %v1352_v16  ;;  %v4028_v54 = vld [vmem:[#allocation4 + $0x1d0] sm:$0xf0]  ;;  %v3887_v57 = vor.u32 %v4656_v49, %v3884_v51  ;;  %v4644_v16 = vld [vmem:[#allocation4 + $0x44] sm:$0xf]  ;;  %v3890_v12 = vld [vmem:[#allocation4 + $0xa8] sm:$0xf] }
  0xde   :  { %v4031_v52 = vor.u32 %v4692_v44, %v4028_v54  ;;  %v3964_v23 = vld [vmem:[#allocation4 + $0x150] sm:$0xf0]  ;;  %v3839_v26 = vor.u32 %v4644_v16, %v3836_v17  ;;  %v3922_v44 = vld [vmem:[#allocation4 + $0xe8] sm:$0xf]  ;;  %v4668_v49 = vld [vmem:[#allocation4 + $0x104] sm:$0xf] }
  0xdf   :  { %3799 = vmatmul.msk.bf16.vlgmr.msra.gmra.mxu1 %vm1266_vm0, %v4945_v50  ;;  %v3947_v50 = vor.u32 %v4674_v21, %v3946_v20  ;;  %v1666_v34 = vmax.f32 %v1366_v24, 0.0  ;;  %v279_v24 = vperm.slane %v4990_v9, 1  ;;  %v3967_v30 = vor.u32 %v4676_v22, %v3964_v23  ;;  %v3932_v51 = vld [vmem:[#allocation4 + $0x110] sm:$0xf0] }
  0xe0   :  { %2469 = vmatpush.bf16.msrb.mxu1 %v3995_v42  ;;  %v3868_v42 = vld [vmem:[#allocation4 + $0x90] sm:$0xf0]  ;;  %2482 = vmatpush.bf16.msrb.mxu2 %v4139_v10 }
  0xe1   :  { %2455 = vmatpush.bf16.msrb.mxu3 %v3867_v60  ;;  %v5005_v45 = vpack.c.bf16 %v1666_v34, %v1662_v43  ;;  %v4012_v60 = vld [vmem:[#allocation4 + $0x1b0] sm:$0xf0]  ;;  %v3871_v3 = vor.u32 %v4652_v59, %v3868_v42  ;;  %v1393_v25 = vpop.f32.mrf.mxu2  ;;  %v1378_v34 = vadd.f32 %v5003_v35, %v279_v24  ;;  %v3923_v59 = vor.u32 %v4667_v48, %v3922_v44  ;;  %v3842_v44 = vld [vmem:[#allocation4 + $0x48] sm:$0xf]  ;;  %v4647_v48 = vld [vmem:[#allocation4 + $0x54] sm:$0xf0] }
  0xe2   :  { %v4015_v62 = vor.u32 %v4688_v56, %v4012_v60  ;;  %v3804_v43 = vld [vmem:[#allocation4 + $0x10] sm:$0xf0]  ;;  %v3935_v42 = vor.u32 %v4668_v49, %v3932_v51  ;;  %v4716_v49 = vld [vmem:[#allocation4 + $0x284] sm:$0xf] }
  0xe3   :  { %v4156_v22 = vld [vmem:[#allocation4 + $0x2d0] sm:$0xf0] }
  0xe4   :  { %2470 = vmatpush.bf16.msrb.mxu1 %v3979_v6  ;;  %v4648_v6 = vld [vmem:[#allocation4 + $0x64] sm:$0xf] }
  0xe5   :  { %2456 = vmatpush.bf16.msrb.mxu3 %v3851_v1  ;;  %v4684_v1 = vld [vmem:[#allocation4 + $0x184] sm:$0xf]  ;;  %v3855_v14 = vor.u32 %v4648_v6, %v3852_v7 }
  0xe6   :  { %v3999_v11 = vor.u32 %v4684_v1, %v3996_v2  ;;  %v4728_v7 = vld [vmem:[#allocation4 + $0x2e4] sm:$0xf] }
  0xe8   :  { %2471 = vmatpush.bf16.msrb.mxu1 %v3963_v19  ;;  %v4718_v19 = vld [vmem:[#allocation4 + $0x28c] sm:$0xf0] }
  0xe9   :  { %2457 = vmatpush.bf16.msrb.mxu3 %v3835_v15  ;;  %v4122_v15 = vld [vmem:[#allocation4 + $0x280] sm:$0xf] }
  0xeb   :  { %v1405_v20 = vpop.f32.mrf.mxu0 }
  0xec   :  { %2472 = vmatpush.bf16.msrb.mxu1 %v3947_v50  ;;  %v4714_v50 = vld [vmem:[#allocation4 + $0x26c] sm:$0xf0]  ;;  %v1419_v32 = vpop.f32.mrf.mxu1 }
  0xed   :  { %2458 = vmatpush.bf16.msrb.mxu3 %v3819_v55  ;;  %v4123_v55 = vor.u32 %v4718_v19, %v4122_v15  ;;  %v4107_v31 = vor.u32 %v4714_v50, %v4106_v27  ;;  %v3874_v19 = vld [vmem:[#allocation4 + $0x88] sm:$0xf] }
  0xef   :  { %2483 = vmatpush.bf16.msrb.mxu2 %v4123_v55  ;;  %v4655_v55 = vld [vmem:[#allocation4 + $0x94] sm:$0xf0] }
  0xf0   :  { %2473 = vmatpush.bf16.msrb.mxu1 %v3931_v38  ;;  %v3823_v38 = vor.u32 %v4640_v28, %v3820_v29  ;;  %v3875_v29 = vor.u32 %v4655_v55, %v3874_v19  ;;  %v4746_v19 = vld [vmem:[#allocation4 + $0x36c] sm:$0xf0]  ;;  %v3924_v55 = vld [vmem:[#allocation4 + $0xf8] sm:$0xf0] }
  0xf1   :  { %2459 = vmatpush.bf16.msrb.mxu3 %v3803_v33  ;;  %v3948_v33 = vld [vmem:[#allocation4 + $0x130] sm:$0xf0] }
  0xf2   :  { %v3951_v54 = vor.u32 %v4672_v8, %v3948_v33  ;;  %v4651_v33 = vld [vmem:[#allocation4 + $0x74] sm:$0xf0] }
  0xf3   :  { %v5008_v21 = vpop.f32.mrf.mxu3  ;;  %2484 = vmatpush.bf16.msrb.mxu2 %v4107_v31  ;;  %v1407_v56 = vpop.f32.mrf.mxu0  ;;  %v4720_v31 = vld [vmem:[#allocation4 + $0x2a4] sm:$0xf] }
  0xf4   :  { %2522 = vmatpush.bf16.msra.mxu1 %v4047_v41  ;;  %2460 = vmatmul.bf16.vlgmr.msrb.gmra.mxu3 %v5005_v45  ;;  %v4636_v41 = vld [vmem:[#allocation4 + $0x4] sm:$0xf]  ;;  %v1421_v2 = vpop.f32.mrf.mxu1 }
  0xf5   :  { %2508 = vmatpush.bf16.msra.mxu3 %v3919_v36  ;;  %v1380_v36 = vadd.f32 %v1379_v0, %v279_v24  ;;  %v3807_v60 = vor.u32 %v4636_v41, %v3804_v43  ;;  %v4663_v0 = vld [vmem:[#allocation4 + $0xd4] sm:$0xf0] }
  0xf6   :  { %v3907_v5 = vor.u32 %v4663_v0, %v3906_v61  ;;  %v4699_v41 = vld [vmem:[#allocation4 + $0x1f4] sm:$0xf0]  ;;  %v4108_v61 = vld [vmem:[#allocation4 + $0x270] sm:$0xf0] }
  0xf7   :  { %v1394_v53 = vadd.f32 %v1393_v25, %v1380_v36  ;;  %v4298_v25 = vld [vmem:[#allocation4 + $0x3e0] sm:$0xf] }
  0xf8   :  { %2523 = vmatpush.bf16.msra.mxu1 %v4031_v52  ;;  %v1392_v52 = vadd.f32 %v1391_v63, %v1378_v34  ;;  %v1447_v35 = vpop.f32.mrf.mxu2  ;;  %v4058_v63 = vld [vmem:[#allocation4 + $0x200] sm:$0xf] }
  0xf9   :  { %2509 = vmatpush.bf16.msra.mxu3 %v3903_v46  ;;  %v4091_v46 = vor.u32 %v4710_v40, %v4090_v39  ;;  %v1408_v1 = vadd.f32 %v1407_v56, %v1394_v53  ;;  %v4282_v36 = vld [vmem:[#allocation4 + $0x3c0] sm:$0xf]  ;;  %v4050_v40 = vld [vmem:[#allocation4 + $0x1e8] sm:$0xf]  ;;  %v4754_v56 = vld [vmem:[#allocation4 + $0x3ac] sm:$0xf0] }
  0xfa   :  { %v1406_v58 = vadd.f32 %v1405_v20, %v1392_v52  ;;  %v4724_v20 = vld [vmem:[#allocation4 + $0x2c4] sm:$0xf]  ;;  %v4051_v51 = vor.u32 %v4699_v41, %v4050_v40  ;;  %v4124_v52 = vld [vmem:[#allocation4 + $0x290] sm:$0xf0]  ;;  %v4266_v53 = vld [vmem:[#allocation4 + $0x3a0] sm:$0xf] }
  0xfb   :  { %v1435_v47 = vpop.f32.mrf.mxu3  ;;  %2485 = vmatpush.bf16.msrb.mxu2 %v4091_v46  ;;  %v1422_v16 = vadd.f32 %v1421_v2, %v1408_v1  ;;  %v4159_v24 = vor.u32 %v4724_v20, %v4156_v22  ;;  %v4643_v1 = vld [vmem:[#allocation4 + $0x34] sm:$0xf0] }
  0xfc   :  { %2524 = vmatpush.bf16.msra.mxu1 %v4015_v62  ;;  %v1420_v4 = vadd.f32 %v1419_v32, %v1406_v58  ;;  %v4140_v32 = vld [vmem:[#allocation4 + $0x2b0] sm:$0xf0]  ;;  %v4267_v58 = vor.u32 %v4754_v56, %v4266_v53  ;;  %v4687_v22 = vld [vmem:[#allocation4 + $0x194] sm:$0xf0]  ;;  %v280_v53 = vperm.slane %v4990_v9, 2 }
  0xfd   :  { %2510 = vmatpush.bf16.msra.mxu3 %v3887_v57  ;;  %v4074_v57 = vld [vmem:[#allocation4 + $0x220] sm:$0xf]  ;;  %v1436_v17 = vadd.f32 %v1435_v47, %v1422_v16  ;;  %v4143_v34 = vor.u32 %v4720_v31, %v4140_v32  ;;  %v4002_v16 = vld [vmem:[#allocation4 + $0x188] sm:$0xf]  ;;  %v4683_v31 = vld [vmem:[#allocation4 + $0x174] sm:$0xf0] }
  0xfe   :  { %v4075_v62 = vor.u32 %v4706_v37, %v4074_v57  ;;  %v1434_v15 = vadd.f32 %v5008_v21, %v1420_v4  ;;  %v4695_v57 = vld [vmem:[#allocation4 + $0x1d4] sm:$0xf0]  ;;  %v4127_v37 = vor.u32 %v4716_v49, %v4124_v52  ;;  %v4018_v4 = vld [vmem:[#allocation4 + $0x1a8] sm:$0xf]  ;;  %v4661_v32 = vld [vmem:[#allocation4 + $0xcc] sm:$0xf] }
  0xff   :  { %v3892_v49 = vld [vmem:[#allocation4 + $0xb8] sm:$0xf0] }
 0x100   :  { %2525 = vmatpush.bf16.msra.mxu1 %v3999_v11  ;;  %2486 = vmatpush.bf16.msrb.mxu2 %v4075_v62  ;;  %v4172_v11 = vld [vmem:[#allocation4 + $0x2f0] sm:$0xf0]  ;;  %v1449_v23 = vpop.f32.mrf.mxu2  ;;  %v1448_v27 = vadd.f32 %v1447_v35, %v1434_v15  ;;  %v4712_v62 = vld [vmem:[#allocation4 + $0x264] sm:$0xf] }
 0x101   :  { %2511 = vmatpush.bf16.msra.mxu3 %v3871_v3  ;;  %v4702_v3 = vld [vmem:[#allocation4 + $0x20c] sm:$0xf0]  ;;  %v1450_v28 = vadd.f32 %v1449_v23, %v1436_v17  ;;  %v4111_v2 = vor.u32 %v4712_v62, %v4108_v61  ;;  %v4665_v23 = vld [vmem:[#allocation4 + $0xec] sm:$0xf]  ;;  %v3876_v61 = vld [vmem:[#allocation4 + $0x98] sm:$0xf0] }
 0x102   :  { %v4059_v6 = vor.u32 %v4702_v3, %v4058_v63  ;;  %v4250_v63 = vld [vmem:[#allocation4 + $0x380] sm:$0xf]  ;;  %v4750_v3 = vld [vmem:[#allocation4 + $0x38c] sm:$0xf0] }
 0x103   :  { %v1461_v10 = vpop.f32.mrf.mxu3  ;;  %v4734_v62 = vld [vmem:[#allocation4 + $0x30c] sm:$0xf0] }
 0x104   :  { %2526 = vmatpush.bf16.msra.mxu1 %v3983_v18  ;;  %2487 = vmatpush.bf16.msrb.mxu2 %v4059_v6  ;;  %v3891_v18 = vor.u32 %v4659_v13, %v3890_v12  ;;  %v1462_v21 = vadd.f32 %v1461_v10, %v1448_v27  ;;  %v4251_v6 = vor.u32 %v4750_v3, %v4250_v63  ;;  %v4639_v12 = vld [vmem:[#allocation4 + $0x14] sm:$0xf0]  ;;  %v4708_v13 = vld [vmem:[#allocation4 + $0x244] sm:$0xf]  ;;  %v4076_v27 = vld [vmem:[#allocation4 + $0x230] sm:$0xf0] }
 0x105   :  { %2512 = vmatpush.bf16.msra.mxu3 %v3855_v14  ;;  %v4175_v14 = vor.u32 %v4728_v7, %v4172_v11  ;;  %v3810_v11 = vld [vmem:[#allocation4 + $0x8] sm:$0xf] }
 0x108   :  { %2527 = vmatpush.bf16.msra.mxu1 %v3967_v30  ;;  %2536 = vmatpush.bf16.msra.mxu2 %v4175_v14  ;;  %v3858_v30 = vld [vmem:[#allocation4 + $0x68] sm:$0xf]  ;;  %v4092_v14 = vld [vmem:[#allocation4 + $0x250] sm:$0xf0] }
 0x109   :  { %2513 = vmatpush.bf16.msra.mxu3 %v3839_v26  ;;  %v4762_v26 = vld [vmem:[#allocation4 + $0x3ec] sm:$0xf0]  ;;  %v3859_v47 = vor.u32 %v4651_v33, %v3858_v30  ;;  %v4095_v17 = vor.u32 %v4708_v13, %v4092_v14 }
 0x10a   :  { %v4299_v50 = vor.u32 %v4762_v26, %v4298_v25  ;;  %v3811_v25 = vor.u32 %v4639_v12, %v3810_v11  ;;  %v4704_v26 = vld [vmem:[#allocation4 + $0x224] sm:$0xf]  ;;  %v4742_v30 = vld [vmem:[#allocation4 + $0x34c] sm:$0xf0]  ;;  %v3938_v11 = vld [vmem:[#allocation4 + $0x108] sm:$0xf] }
 0x10b   :  { %v1463_v8 = vpop.f32.mrf.mxu3  ;;  %v5017_v7 = vpop.f32.mrf.mxu0  ;;  %v4079_v33 = vor.u32 %v4704_v26, %v4076_v27  ;;  %v4649_v12 = vld [vmem:[#allocation4 + $0x6c] sm:$0xf] }
 0x10c   :  { %2528 = vmatpush.bf16.msra.mxu1 %v3951_v54  ;;  %2537 = vmatpush.bf16.msra.mxu2 %v4159_v24  ;;  %v1464_v39 = vadd.f32 %v1463_v8, %v1450_v28  ;;  %v1663_v54 = vmax.f32 %v1462_v21, 0.0  ;;  %v1475_v20 = vpop.f32.mrf.mxu1  ;;  %v3927_v28 = vor.u32 %v4665_v23, %v3924_v55  ;;  %v3986_v21 = vld [vmem:[#allocation4 + $0x168] sm:$0xf]  ;;  %v3908_v8 = vld [vmem:[#allocation4 + $0xd8] sm:$0xf0] }
 0x10d   :  { %2514 = vmatpush.bf16.msra.mxu3 %v3823_v38  ;;  %2494 = vmatpush.bf16.msrb.mxu0 %v4299_v50  ;;  %v4758_v38 = vld [vmem:[#allocation4 + $0x3cc] sm:$0xf0]  ;;  %v4003_v50 = vor.u32 %v4687_v22, %v4002_v16  ;;  %v3987_v41 = vor.u32 %v4683_v31, %v3986_v21  ;;  %v1476_v63 = vadd.f32 %v1475_v20, %v280_v53  ;;  %v4756_v16 = vld [vmem:[#allocation4 + $0x3c4] sm:$0xf]  ;;  %v4697_v22 = vld [vmem:[#allocation4 + $0x1ec] sm:$0xf] }
 0x10e   :  { %v4283_v43 = vor.u32 %v4758_v38, %v4282_v36  ;;  %v1667_v46 = vmax.f32 %v1464_v39, 0.0  ;;  %v4700_v38 = vld [vmem:[#allocation4 + $0x204] sm:$0xf]  ;;  %v4060_v39 = vld [vmem:[#allocation4 + $0x210] sm:$0xf0] }
 0x10f   :  { %v4052_v20 = vld [vmem:[#allocation4 + $0x1f8] sm:$0xf0]  ;;  %v4645_v26 = vld [vmem:[#allocation4 + $0x4c] sm:$0xf]  ;;  %v4268_v21 = vld [vmem:[#allocation4 + $0x3b0] sm:$0xf0] }
 0x110   :  { %2529 = vmatpush.bf16.msra.mxu1 %v3935_v42  ;;  %2538 = vmatpush.bf16.msra.mxu2 %v4143_v34  ;;  %v5014_v35 = vpack.c.bf16 %v1667_v46, %v1663_v54  ;;  %v3826_v42 = vld [vmem:[#allocation4 + $0x28] sm:$0xf]  ;;  %v4202_v54 = vld [vmem:[#allocation4 + $0x320] sm:$0xf]  ;;  %v4738_v46 = vld [vmem:[#allocation4 + $0x32c] sm:$0xf0]  ;;  %v4055_v27 = vor.u32 %v4697_v22, %v4052_v20 }
 0x111   :  { %2515 = vmatpush.bf16.msra.mxu3 %v3807_v60  ;;  %2495 = vmatpush.bf16.msrb.mxu0 %v4283_v43  ;;  %v4034_v60 = vld [vmem:[#allocation4 + $0x1c8] sm:$0xf]  ;;  %v3827_v10 = vor.u32 %v4643_v1, %v3826_v42  ;;  %v3911_v43 = vor.u32 %v4661_v32, %v3908_v8  ;;  %v4203_v52 = vor.u32 %v4738_v46, %v4202_v54  ;;  %v4186_v42 = vld [vmem:[#allocation4 + $0x300] sm:$0xf]  ;;  %v4760_v1 = vld [vmem:[#allocation4 + $0x3e4] sm:$0xf] }
 0x112   :  { %2474 = vmatmul.bf16.vlgmr.msrb.gmra.mxu1 %v5014_v35  ;;  %v4035_v0 = vor.u32 %v4695_v57, %v4034_v60  ;;  %v3954_v60 = vld [vmem:[#allocation4 + $0x128] sm:$0xf]  ;;  %v4675_v57 = vld [vmem:[#allocation4 + $0x134] sm:$0xf0]  ;;  %v4693_v31 = vld [vmem:[#allocation4 + $0x1cc] sm:$0xf] }
 0x113   :  { %v5019_v40 = vpop.f32.mrf.mxu0  ;;  %v4036_v32 = vld [vmem:[#allocation4 + $0x1d8] sm:$0xf0]  ;;  %v4736_v22 = vld [vmem:[#allocation4 + $0x324] sm:$0xf]  ;;  %v4204_v20 = vld [vmem:[#allocation4 + $0x330] sm:$0xf0] }
 0x114   :  { %2516 = vmatmul.bf16.vlgmr.msra.gmra.mxu3 %v5005_v45  ;;  %2578 = vmatpush.bf16.msrb.mxu1 %v4051_v51  ;;  %v4063_v51 = vor.u32 %v4700_v38, %v4060_v39  ;;  %v1477_v56 = vpop.f32.mrf.mxu1  ;;  %v4039_v38 = vor.u32 %v4693_v31, %v4036_v32  ;;  %v3828_v39 = vld [vmem:[#allocation4 + $0x38] sm:$0xf0]  ;;  %v281_v31 = vperm.slane %v4990_v9, 3  ;;  %v4673_v32 = vld [vmem:[#allocation4 + $0x12c] sm:$0xf] }
 0x115   :  { %2564 = vmatpush.bf16.msrb.mxu3 %v3923_v59  ;;  %v3843_v59 = vor.u32 %v4647_v48, %v3842_v44  ;;  %2539 = vmatpush.bf16.msra.mxu2 %v4127_v37  ;;  %v3970_v44 = vld [vmem:[#allocation4 + $0x148] sm:$0xf]  ;;  %v4657_v48 = vld [vmem:[#allocation4 + $0xac] sm:$0xf] }
 0x116   :  { %2496 = vmatpush.bf16.msrb.mxu0 %v4267_v58  ;;  %v3895_v58 = vor.u32 %v4657_v48, %v3892_v49 }
 0x117   :  { %v1489_v36 = vpop.f32.mrf.mxu3 }
 0x118   :  { %2579 = vmatpush.bf16.msrb.mxu1 %v4035_v0  ;;  %v4187_v0 = vor.u32 %v4734_v62, %v4186_v42  ;;  %v1517_v13 = vpop.f32.mrf.mxu2  ;;  %v4685_v42 = vld [vmem:[#allocation4 + $0x18c] sm:$0xf]  ;;  %v4004_v62 = vld [vmem:[#allocation4 + $0x198] sm:$0xf0] }
 0x119   :  { %2565 = vmatpush.bf16.msrb.mxu3 %v3907_v5  ;;  %v4691_v5 = vld [vmem:[#allocation4 + $0x1b4] sm:$0xf0]  ;;  %2540 = vmatpush.bf16.msra.mxu2 %v4111_v2  ;;  %v4300_v2 = vld [vmem:[#allocation4 + $0x3f0] sm:$0xf0] }
 0x11a   :  { %v4019_v15 = vor.u32 %v4691_v5, %v4018_v4  ;;  %2497 = vmatpush.bf16.msrb.mxu0 %v4251_v6  ;;  %v4303_v3 = vor.u32 %v4760_v1, %v4300_v2  ;;  %v3955_v5 = vor.u32 %v4675_v57, %v3954_v60  ;;  %v3812_v57 = vld [vmem:[#allocation4 + $0x18] sm:$0xf0] }
 0x11b   :  { %v5024_v4 = vpop.f32.mrf.mxu0 }
 0x11c   :  { %2580 = vmatpush.bf16.msrb.mxu1 %v4019_v15  ;;  %v3860_v15 = vld [vmem:[#allocation4 + $0x78] sm:$0xf0] }
 0x11d   :  { %2566 = vmatpush.bf16.msrb.mxu3 %v3891_v18  ;;  %v4234_v18 = vld [vmem:[#allocation4 + $0x360] sm:$0xf]  ;;  %2541 = vmatpush.bf16.msra.mxu2 %v4095_v17  ;;  %v4284_v17 = vld [vmem:[#allocation4 + $0x3d0] sm:$0xf0] }
 0x11e   :  { %v4235_v24 = vor.u32 %v4746_v19, %v4234_v18  ;;  %v1490_v18 = vadd.f32 %v1489_v36, %v1476_v63  ;;  %v1478_v19 = vadd.f32 %v1477_v56, %v280_v53  ;;  %v4287_v23 = vor.u32 %v4756_v16, %v4284_v17  ;;  %v4637_v53 = vld [vmem:[#allocation4 + $0xc] sm:$0xf]  ;;  %v4178_v16 = vld [vmem:[#allocation4 + $0x2e8] sm:$0xf]  ;;  %v4731_v17 = vld [vmem:[#allocation4 + $0x2f4] sm:$0xf0] }
 0x11f   :  { %v1491_v14 = vpop.f32.mrf.mxu3  ;;  %v3815_v1 = vor.u32 %v4637_v53, %v3812_v57  ;;  %v4007_v63 = vor.u32 %v4685_v42, %v4004_v62  ;;  %v4715_v53 = vld [vmem:[#allocation4 + $0x274] sm:$0xf0]  ;;  %v4098_v62 = vld [vmem:[#allocation4 + $0x248] sm:$0xf] }
 0x120   :  { %2498 = vmatpush.bf16.msrb.mxu0 %v4235_v24  ;;  %2581 = vmatpush.bf16.msrb.mxu1 %v4003_v50  ;;  %v3844_v50 = vld [vmem:[#allocation4 + $0x58] sm:$0xf0]  ;;  %v1519_v49 = vpop.f32.mrf.mxu2 }
 0x121   :  { %2567 = vmatpush.bf16.msrb.mxu3 %v3875_v29  ;;  %v4218_v29 = vld [vmem:[#allocation4 + $0x340] sm:$0xf]  ;;  %2542 = vmatpush.bf16.msra.mxu2 %v4079_v33  ;;  %v3847_v33 = vor.u32 %v4645_v26, %v3844_v50  ;;  %v4179_v26 = vor.u32 %v4731_v17, %v4178_v16  ;;  %v4162_v50 = vld [vmem:[#allocation4 + $0x2c8] sm:$0xf]  ;;  %v4729_v17 = vld [vmem:[#allocation4 + $0x2ec] sm:$0xf] }
 0x122   :  { %v4219_v34 = vor.u32 %v4742_v30, %v4218_v29  ;;  %2530 = vmatmul.bf16.vlgmr.msra.gmra.mxu1 %v5014_v35  ;;  %v1504_v29 = vadd.f32 %v5017_v7, %v1490_v18  ;;  %v1492_v30 = vadd.f32 %v1491_v14, %v1478_v19  ;;  %v4689_v7 = vld [vmem:[#allocation4 + $0x1ac] sm:$0xf] }
 0x123   :  { %v1561_v46 = vpop.f32.mrf.mxu0 }
 0x124   :  { %2499 = vmatpush.bf16.msrb.mxu0 %v4219_v34  ;;  %2582 = vmatpush.bf16.msrb.mxu1 %v3987_v41  ;;  %v4641_v34 = vld [vmem:[#allocation4 + $0x2c] sm:$0xf]  ;;  %v4748_v41 = vld [vmem:[#allocation4 + $0x384] sm:$0xf]  ;;  %v1506_v54 = vadd.f32 %v5019_v40, %v1492_v30  ;;  %v4188_v30 = vld [vmem:[#allocation4 + $0x310] sm:$0xf0] }
 0x125   :  { %2568 = vmatpush.bf16.msrb.mxu3 %v3859_v47  ;;  %v4679_v47 = vld [vmem:[#allocation4 + $0x154] sm:$0xf0]  ;;  %2543 = vmatpush.bf16.msra.mxu2 %v4063_v51 }
 0x126   :  { %v3971_v37 = vor.u32 %v4679_v47, %v3970_v44  ;;  %v1518_v44 = vadd.f32 %v1517_v13, %v1504_v29  ;;  %v4020_v47 = vld [vmem:[#allocation4 + $0x1b8] sm:$0xf0]  ;;  %v4732_v29 = vld [vmem:[#allocation4 + $0x304] sm:$0xf] }
 0x127   :  { %v4023_v60 = vor.u32 %v4689_v7, %v4020_v47  ;;  %v4130_v7 = vld [vmem:[#allocation4 + $0x288] sm:$0xf]  ;;  %v4719_v47 = vld [vmem:[#allocation4 + $0x294] sm:$0xf0] }
 0x128   :  { %2500 = vmatpush.bf16.msrb.mxu0 %v4203_v52  ;;  %2583 = vmatpush.bf16.msrb.mxu1 %v3971_v37  ;;  %v3831_v52 = vor.u32 %v4641_v34, %v3828_v39  ;;  %v4744_v37 = vld [vmem:[#allocation4 + $0x364] sm:$0xf] }
 0x129   :  { %2569 = vmatpush.bf16.msrb.mxu3 %v3843_v59  ;;  %v4653_v59 = vld [vmem:[#allocation4 + $0x8c] sm:$0xf] }
 0x12a   :  { %v3879_v6 = vor.u32 %v4653_v59, %v3876_v61  ;;  %v1520_v59 = vadd.f32 %v1519_v49, %v1506_v54  ;;  %v3940_v54 = vld [vmem:[#allocation4 + $0x118] sm:$0xf0] }
 0x12c   :  { %2501 = vmatpush.bf16.msrb.mxu0 %v4187_v0  ;;  %v1531_v55 = vpop.f32.mrf.mxu1  ;;  %2584 = vmatpush.bf16.msrb.mxu1 %v3955_v5  ;;  %v4220_v5 = vld [vmem:[#allocation4 + $0x350] sm:$0xf0] }
 0x12d   :  { %2570 = vmatpush.bf16.msrb.mxu3 %v3827_v10  ;;  %v4671_v10 = vld [vmem:[#allocation4 + $0x114] sm:$0xf0]  ;;  %v1532_v51 = vadd.f32 %v1531_v55, %v1518_v44  ;;  %v4669_v44 = vld [vmem:[#allocation4 + $0x10c] sm:$0xf] }
 0x12e   :  { %v3939_v24 = vor.u32 %v4671_v10, %v3938_v11  ;;  %v4681_v10 = vld [vmem:[#allocation4 + $0x16c] sm:$0xf] }
 0x130   :  { %2550 = vmatpush.bf16.msra.mxu0 %v4303_v3  ;;  %2585 = vmatpush.bf16.msrb.mxu1 %v3939_v24  ;;  %v4740_v3 = vld [vmem:[#allocation4 + $0x344] sm:$0xf]  ;;  %v4677_v24 = vld [vmem:[#allocation4 + $0x14c] sm:$0xf] }
 0x131   :  { %2571 = vmatpush.bf16.msrb.mxu3 %v3811_v25  ;;  %v3863_v25 = vor.u32 %v4649_v12, %v3860_v15  ;;  %v3988_v12 = vld [vmem:[#allocation4 + $0x178] sm:$0xf0]  ;;  %v4223_v13 = vor.u32 %v4740_v3, %v4220_v5  ;;  %v1587_v15 = vpop.f32.mrf.mxu0  ;;  %v4707_v3 = vld [vmem:[#allocation4 + $0x234] sm:$0xf0] }
 0x132   :  { %v3991_v19 = vor.u32 %v4681_v10, %v3988_v12 }
 0x133   :  { %2586 = vmatmul.bf16.vlgmr.msrb.gmra.mxu1 %v5014_v35 }
 0x134   :  { %2572 = vmatmul.bf16.vlgmr.msrb.gmra.mxu3 %v5005_v45  ;;  %2551 = vmatpush.bf16.msra.mxu0 %v4287_v23  ;;  %v1533_v56 = vpop.f32.mrf.mxu1 }
 0x135   :  { %2620 = vmatpush.bf16.msra.mxu3 %v3927_v28  ;;  %v4752_v28 = vld [vmem:[#allocation4 + $0x3a4] sm:$0xf]  ;;  %2634 = vmatpush.bf16.msra.mxu1 %v4055_v27  ;;  %v1534_v0 = vadd.f32 %v1533_v56, %v1520_v59 }
 0x136   :  { %v4271_v8 = vor.u32 %v4752_v28, %v4268_v21  ;;  %v4727_v28 = vld [vmem:[#allocation4 + $0x2d4] sm:$0xf0] }
 0x137   :  { %v1545_v36 = vpop.f32.mrf.mxu3  ;;  %v4163_v34 = vor.u32 %v4727_v28, %v4162_v50  ;;  %v4306_v50 = vld [vmem:[#allocation4 + $0x3e8] sm:$0xf]  ;;  %v4763_v28 = vld [vmem:[#allocation4 + $0x3f4] sm:$0xf0] }
 0x138   :  { %2552 = vmatpush.bf16.msra.mxu0 %v4271_v8  ;;  %v1546_v40 = vadd.f32 %v1545_v36, %v1532_v51  ;;  %v1573_v18 = vpop.f32.mrf.mxu2  ;;  %v3956_v8 = vld [vmem:[#allocation4 + $0x138] sm:$0xf0]  ;;  %v4723_v36 = vld [vmem:[#allocation4 + $0x2b4] sm:$0xf0]  ;;  %v4131_v51 = vor.u32 %v4719_v47, %v4130_v7  ;;  %v4258_v47 = vld [vmem:[#allocation4 + $0x388] sm:$0xf] }
 0x139   :  { %2621 = vmatpush.bf16.msra.mxu3 %v3911_v43  ;;  %v4252_v43 = vld [vmem:[#allocation4 + $0x390] sm:$0xf0]  ;;  %2635 = vmatpush.bf16.msra.mxu1 %v4039_v38  ;;  %v3959_v39 = vor.u32 %v4673_v32, %v3956_v8  ;;  %v4721_v32 = vld [vmem:[#allocation4 + $0x2ac] sm:$0xf]  ;;  %v4148_v8 = vld [vmem:[#allocation4 + $0x2b8] sm:$0xf0] }
 0x13a   :  { %v4255_v48 = vor.u32 %v4748_v41, %v4252_v43  ;;  %v1574_v41 = vadd.f32 %v1573_v18, %v281_v31  ;;  %v1589_v43 = vpop.f32.mrf.mxu0  ;;  %v4180_v18 = vld [vmem:[#allocation4 + $0x2f8] sm:$0xf0] }
 0x13b   :  { %v4116_v7 = vld [vmem:[#allocation4 + $0x278] sm:$0xf0] }
 0x13c   :  { %2553 = vmatpush.bf16.msra.mxu0 %v4255_v48  ;;  %v3943_v48 = vor.u32 %v4669_v44, %v3940_v54  ;;  %v1588_v49 = vadd.f32 %v1587_v15, %v1574_v41  ;;  %v4066_v15 = vld [vmem:[#allocation4 + $0x208] sm:$0xf]  ;;  %v4132_v41 = vld [vmem:[#allocation4 + $0x298] sm:$0xf0]  ;;  %v4755_v44 = vld [vmem:[#allocation4 + $0x3b4] sm:$0xf0] }
 0x13d   :  { %2622 = vmatpush.bf16.msra.mxu3 %v3895_v58  ;;  %v4236_v58 = vld [vmem:[#allocation4 + $0x370] sm:$0xf0]  ;;  %2636 = vmatpush.bf16.msra.mxu1 %v4023_v60 }
 0x13e   :  { %v4239_v61 = vor.u32 %v4744_v37, %v4236_v58 }
 0x13f   :  { %v1547_v2 = vpop.f32.mrf.mxu3 }
 0x140   :  { %v1548_v11 = vadd.f32 %v1547_v2, %v1534_v0  ;;  %2554 = vmatpush.bf16.msra.mxu0 %v4239_v61  ;;  %v4711_v61 = vld [vmem:[#allocation4 + $0x254] sm:$0xf0] }
 0x141   :  { %2623 = vmatpush.bf16.msra.mxu3 %v3879_v6  ;;  %v1560_v6 = vadd.f32 %v5024_v4, %v1546_v40  ;;  %2637 = vmatpush.bf16.msra.mxu1 %v4007_v63  ;;  %v4207_v4 = vor.u32 %v4736_v22, %v4204_v20  ;;  %v4082_v63 = vld [vmem:[#allocation4 + $0x228] sm:$0xf] }
 0x142   :  { %v1562_v14 = vadd.f32 %v1561_v46, %v1548_v11  ;;  %v1575_v46 = vpop.f32.mrf.mxu2  ;;  %v4083_v12 = vor.u32 %v4707_v3, %v4082_v63  ;;  %v4739_v63 = vld [vmem:[#allocation4 + $0x334] sm:$0xf0] }
 0x143   :  { %v1664_v23 = vmax.f32 %v1560_v6, 0.0  ;;  %v1576_v37 = vadd.f32 %v1575_v46, %v281_v31  ;;  %v4307_v31 = vor.u32 %v4763_v28, %v4306_v50  ;;  %v4737_v50 = vld [vmem:[#allocation4 + $0x32c] sm:$0xf]  ;;  %v4212_v28 = vld [vmem:[#allocation4 + $0x338] sm:$0xf0] }
 0x144   :  { %v1668_v55 = vmax.f32 %v1562_v14, 0.0  ;;  %2555 = vmatpush.bf16.msra.mxu0 %v4223_v13 }
 0x145   :  { %2624 = vmatpush.bf16.msra.mxu3 %v3863_v25  ;;  %v3972_v25 = vld [vmem:[#allocation4 + $0x158] sm:$0xf0]  ;;  %2638 = vmatpush.bf16.msra.mxu1 %v3991_v19  ;;  %v1590_v0 = vadd.f32 %v1589_v43, %v1576_v37  ;;  %v4274_v43 = vld [vmem:[#allocation4 + $0x3a8] sm:$0xf] }
 0x146   :  { %v5031_v27 = vpack.c.bf16 %v1668_v55, %v1664_v23  ;;  %v3975_v21 = vor.u32 %v4677_v24, %v3972_v25  ;;  %v4183_v55 = vor.u32 %v4729_v17, %v4180_v18  ;;  %v4725_v25 = vld [vmem:[#allocation4 + $0x2cc] sm:$0xf]  ;;  %v4275_v46 = vor.u32 %v4755_v44, %v4274_v43  ;;  %v4276_v18 = vld [vmem:[#allocation4 + $0x3b8] sm:$0xf0]  ;;  %v4764_v44 = vld [vmem:[%s5164_s5] sm:$0xff] }
 0x147   :  { %v4753_v17 = vld [vmem:[#allocation4 + $0x3ac] sm:$0xf] }
 0x148   :  { %2488 = vmatmul.bf16.vlgmr.msrb.gmra.mxu2 %v5031_v27  ;;  %2556 = vmatpush.bf16.msra.mxu0 %v4207_v4  ;;  %v4164_v4 = vld [vmem:[#allocation4 + $0x2d8] sm:$0xf0]  ;;  %v4777_v43 = vld [vmem:[%s5164_s5 + $0x68] sm:$0xff] }
 0x149   :  { %2625 = vmatpush.bf16.msra.mxu3 %v3847_v33  ;;  %v4191_v33 = vor.u32 %v4732_v29, %v4188_v30  ;;  %2592 = vmatpush.bf16.msrb.mxu2 %v4179_v26  ;;  %v4167_v30 = vor.u32 %v4725_v25, %v4164_v4  ;;  %v4228_v4 = vld [vmem:[#allocation4 + $0x358] sm:$0xf0] }
 0x14a   :  { %2639 = vmatpush.bf16.msra.mxu1 %v3975_v21 }
 0x14c   :  { %v1601_v38 = vpop.f32.mrf.mxu1  ;;  %2557 = vmatpush.bf16.msra.mxu0 %v4191_v33 }
 0x14d   :  { %2626 = vmatpush.bf16.msra.mxu3 %v3831_v52  ;;  %2593 = vmatpush.bf16.msrb.mxu2 %v4163_v34  ;;  %v4114_v52 = vld [vmem:[#allocation4 + $0x268] sm:$0xf]  ;;  %v1602_v60 = vadd.f32 %v1601_v38, %v1588_v49 }
 0x14e   :  { %2640 = vmatpush.bf16.msra.mxu1 %v3959_v39  ;;  %v4115_v59 = vor.u32 %v4715_v53, %v4114_v52  ;;  %v4290_v34 = vld [vmem:[#allocation4 + $0x3c8] sm:$0xf]  ;;  %v4717_v39 = vld [vmem:[#allocation4 + $0x28c] sm:$0xf]  ;;  %v4100_v53 = vld [vmem:[#allocation4 + $0x258] sm:$0xf0] }
 0x14f   :  { %v1643_v40 = vpop.f32.mrf.mxu0  ;;  %v4135_v54 = vor.u32 %v4717_v39, %v4132_v41  ;;  %v4709_v52 = vld [vmem:[#allocation4 + $0x24c] sm:$0xf]  ;;  %v4778_v39 = vld [vmem:[%s5164_s5 + $0x70] sm:$0xff] }
 0x150   :  { %v4765_v41 = vld [vmem:[%s5164_s5 + $0x8] sm:$0xff] }
 0x151   :  { %2627 = vmatpush.bf16.msra.mxu3 %v3815_v1  ;;  %v4099_v1 = vor.u32 %v4711_v61, %v4098_v62 }
 0x152   :  { %2641 = vmatpush.bf16.msra.mxu1 %v3943_v48  ;;  %v4751_v48 = vld [vmem:[#allocation4 + $0x394] sm:$0xf0] }
 0x154   :  { %2628 = vmatmul.bf16.vlgmr.msra.gmra.mxu3 %v5005_v45  ;;  %v4146_v45 = vld [vmem:[#allocation4 + $0x2a8] sm:$0xf]  ;;  %v1603_v56 = vpop.f32.mrf.mxu1 }
 0x155   :  { %v4147_v9 = vor.u32 %v4723_v36, %v4146_v45  ;;  %2642 = vmatmul.bf16.vlgmr.msra.gmra.mxu1 %v5014_v35  ;;  %v1604_v5 = vadd.f32 %v1603_v56, %v1590_v0  ;;  %v4703_v35 = vld [vmem:[#allocation4 + $0x214] sm:$0xf0]  ;;  %v4151_v36 = vor.u32 %v4721_v32, %v4148_v8  ;;  %v4242_v56 = vld [vmem:[#allocation4 + $0x368] sm:$0xf]  ;;  %v4701_v0 = vld [vmem:[#allocation4 + $0x20c] sm:$0xf] }
 0x156   :  { %v4067_v20 = vor.u32 %v4703_v35, %v4066_v15  ;;  %v4759_v45 = vld [vmem:[#allocation4 + $0x3d4] sm:$0xf0]  ;;  %v4757_v15 = vld [vmem:[#allocation4 + $0x3cc] sm:$0xf]  ;;  %v4292_v35 = vld [vmem:[#allocation4 + $0x3d8] sm:$0xf0] }
 0x157   :  { %2594 = vmatpush.bf16.msrb.mxu2 %v4147_v9  ;;  %v1615_v57 = vpop.f32.mrf.mxu3  ;;  %v1645_v19 = vpop.f32.mrf.mxu0  ;;  %v4291_v38 = vor.u32 %v4759_v45, %v4290_v34  ;;  %v4713_v9 = vld [vmem:[#allocation4 + $0x26c] sm:$0xf]  ;;  %v4771_v32 = vld [vmem:[%s5164_s5 + $0x38] sm:$0xff]  ;;  %v4770_v8 = vld [vmem:[%s5164_s5 + $0x30] sm:$0xff] }
 0x158   :  { %v1629_v58 = vpop.f32.mrf.mxu2  ;;  %v1616_v42 = vadd.f32 %v1615_v57, %v1602_v60  ;;  %2544 = vmatmul.bf16.vlgmr.msra.gmra.mxu2 %v5031_v27  ;;  %v4119_v49 = vor.u32 %v4713_v9, %v4116_v7  ;;  %v4747_v60 = vld [vmem:[#allocation4 + $0x374] sm:$0xf0]  ;;  %v4103_v57 = vor.u32 %v4709_v52, %v4100_v53  ;;  %2948 = vmatpush.bf16.msrb.mxu3 %v4771_v32  ;;  %v4769_v34 = vld [vmem:[%s5164_s5 + $0x28] sm:$0xff]  ;;  %v4768_v45 = vld [vmem:[%s5164_s5 + $0x20] sm:$0xff] }
 0x159   :  { %v4243_v37 = vor.u32 %v4747_v60, %v4242_v56  ;;  %v4787_v9 = vld [vmem:[%s5164_s5 + $0xb8] sm:$0xff]  ;;  %v4773_v52 = vld [vmem:[%s5164_s5 + $0x48] sm:$0xff]  ;;  %v5102_v56 = vld [vmem:[%s5163_s4] sm:$0xf] }
 0x15a   :  { %v1630_v2 = vadd.f32 %v1629_v58, %v1616_v42  ;;  %v4705_v58 = vld [vmem:[#allocation4 + $0x22c] sm:$0xf]  ;;  %v4743_v42 = vld [vmem:[#allocation4 + $0x354] sm:$0xf0] }
 0x15b   :  { %2595 = vmatpush.bf16.msrb.mxu2 %v4131_v51  ;;  %v4259_v51 = vor.u32 %v4751_v48, %v4258_v47  ;;  %v4785_v53 = vld [vmem:[%s5164_s5 + $0xa8] sm:$0xff] }
 0x15c   :  { %v1657_v6 = vpop.f32.mrf.mxu1  ;;  %v1644_v13 = vadd.f32 %v1643_v40, %v1630_v2  ;;  %v4226_v40 = vld [vmem:[#allocation4 + $0x348] sm:$0xf]  ;;  %2949 = vmatpush.bf16.msrb.mxu3 %v4770_v8 }
 0x15d   :  { %v4227_v61 = vor.u32 %v4743_v42, %v4226_v40  ;;  %v4210_v2 = vld [vmem:[#allocation4 + $0x328] sm:$0xf]  ;;  %v1804_v40 = vperm.slane %v5102_v56, 0  ;;  %v4783_v42 = vld [vmem:[%s5164_s5 + $0x98] sm:$0xff] }
 0x15e   :  { %v1658_v23 = vadd.f32 %v1657_v6, %v1644_v13  ;;  %v4194_v6 = vld [vmem:[#allocation4 + $0x308] sm:$0xf] }
 0x15f   :  { %2596 = vmatpush.bf16.msrb.mxu2 %v4115_v59  ;;  %v1617_v11 = vpop.f32.mrf.mxu3  ;;  %v4084_v59 = vld [vmem:[#allocation4 + $0x238] sm:$0xf0] }
 0x160   :  { %v1618_v10 = vadd.f32 %v1617_v11, %v1604_v5  ;;  %v1631_v14 = vpop.f32.mrf.mxu2  ;;  %v1665_v21 = vmax.f32 %v1658_v23, 0.0  ;;  %v4087_v62 = vor.u32 %v4705_v58, %v4084_v59  ;;  %v4211_v5 = vor.u32 %v4739_v63, %v4210_v2  ;;  %v4735_v11 = vld [vmem:[#allocation4 + $0x314] sm:$0xf0]  ;;  %2950 = vmatpush.bf16.msrb.mxu3 %v4769_v34  ;;  %v4782_v2 = vld [vmem:[%s5164_s5 + $0x90] sm:$0xff] }
 0x161   :  { %v4195_v13 = vor.u32 %v4735_v11, %v4194_v6 }
 0x162   :  { %v1632_v16 = vadd.f32 %v1631_v14, %v1618_v10  ;;  %v4761_v10 = vld [vmem:[#allocation4 + $0x3ec] sm:$0xf] }
 0x163   :  { %2597 = vmatpush.bf16.msrb.mxu2 %v4099_v1  ;;  %v4068_v1 = vld [vmem:[#allocation4 + $0x218] sm:$0xf0] }
 0x164   :  { %v1646_v22 = vadd.f32 %v1645_v19, %v1632_v16  ;;  %v1659_v24 = vpop.f32.mrf.mxu1  ;;  %v4071_v3 = vor.u32 %v4701_v0, %v4068_v1  ;;  %v4295_v16 = vor.u32 %v4757_v15, %v4292_v35  ;;  %v4279_v19 = vor.u32 %v4753_v17, %v4276_v18  ;;  %2951 = vmatpush.bf16.msrb.mxu3 %v4768_v45  ;;  %v4780_v17 = vld [vmem:[%s5164_s5 + $0x80] sm:$0xff]  ;;  %v4795_v18 = vld [vmem:[%s5164_s5 + $0xf8] sm:$0xff] }
 0x166   :  { %v1660_v26 = vadd.f32 %v1659_v24, %v1646_v22  ;;  %v4749_v22 = vld [vmem:[#allocation4 + $0x38c] sm:$0xf]  ;;  %v4244_v24 = vld [vmem:[#allocation4 + $0x378] sm:$0xf0] }
 0x167   :  { %2598 = vmatpush.bf16.msrb.mxu2 %v4083_v12  ;;  %v4308_v12 = vld [vmem:[#allocation4 + $0x3f8] sm:$0xf0] }
 0x168   :  { %v1669_v29 = vmax.f32 %v1660_v26, 0.0  ;;  %v4311_v14 = vor.u32 %v4761_v10, %v4308_v12 }
 0x16a   :  { %v5037_v33 = vpack.c.bf16 %v1669_v29, %v1665_v21  ;;  %v4215_v21 = vor.u32 %v4737_v50, %v4212_v28  ;;  %v4733_v29 = vld [vmem:[#allocation4 + $0x30c] sm:$0xf] }
 0x16b   :  { %2599 = vmatpush.bf16.msrb.mxu2 %v4067_v20  ;;  %v4260_v20 = vld [vmem:[#allocation4 + $0x398] sm:$0xf0] }
 0x16c   :  { %2502 = vmatmul.bf16.vlgmr.msrb.gmra.mxu0 %v5037_v33  ;;  %v4263_v23 = vor.u32 %v4749_v22, %v4260_v20 }
 0x16d   :  { %2606 = vmatpush.bf16.msrb.mxu0 %v4307_v31 }
 0x16e   :  { %2600 = vmatmul.bf16.vlgmr.msrb.gmra.mxu2 %v5031_v27 }
 0x16f   :  { %2648 = vmatpush.bf16.msra.mxu2 %v4183_v55  ;;  %v4745_v55 = vld [vmem:[#allocation4 + $0x36c] sm:$0xf] }
 0x170   :  { %v4247_v25 = vor.u32 %v4745_v55, %v4244_v24  ;;  %v4794_v55 = vld [vmem:[%s5164_s5 + $0xf0] sm:$0xff] }
 0x171   :  { %2607 = vmatpush.bf16.msrb.mxu0 %v4291_v38  ;;  %v4766_v38 = vld [vmem:[%s5164_s5 + $0x10] sm:$0xff] }
 0x173   :  { %2649 = vmatpush.bf16.msra.mxu2 %v4167_v30  ;;  %v4196_v30 = vld [vmem:[#allocation4 + $0x318] sm:$0xf0] }
 0x174   :  { %v4199_v31 = vor.u32 %v4733_v29, %v4196_v30  ;;  %v4792_v29 = vld [vmem:[%s5164_s5 + $0xe0] sm:$0xff] }
 0x175   :  { %2608 = vmatpush.bf16.msrb.mxu0 %v4275_v46  ;;  %v4775_v46 = vld [vmem:[%s5164_s5 + $0x58] sm:$0xff] }
 0x177   :  { %2650 = vmatpush.bf16.msra.mxu2 %v4151_v36  ;;  %v4779_v36 = vld [vmem:[%s5164_s5 + $0x78] sm:$0xff]  ;;  %v2461_v47 = vpop.f32.mrf.mxu3 }
 0x178   :  { %2962 = vmatpush.bf16.msrb.mxu1 %v4779_v36 }
 0x179   :  { %2609 = vmatpush.bf16.msrb.mxu0 %v4259_v51  ;;  %v4786_v51 = vld [vmem:[%s5164_s5 + $0xb0] sm:$0xff] }
 0x17b   :  { %2651 = vmatpush.bf16.msra.mxu2 %v4135_v54  ;;  %v4776_v54 = vld [vmem:[%s5164_s5 + $0x60] sm:$0xff] }
 0x17c   :  { %2558 = vmatmul.bf16.vlgmr.msra.gmra.mxu0 %v5037_v33  ;;  %2963 = vmatpush.bf16.msrb.mxu1 %v4778_v39  ;;  %v4791_v39 = vld [vmem:[%s5164_s5 + $0xd8] sm:$0xff] }
 0x17d   :  { %2610 = vmatpush.bf16.msrb.mxu0 %v4243_v37  ;;  %v4784_v37 = vld [vmem:[%s5164_s5 + $0xa0] sm:$0xff] }
 0x17f   :  { %2652 = vmatpush.bf16.msra.mxu2 %v4119_v49  ;;  %v4774_v49 = vld [vmem:[%s5164_s5 + $0x50] sm:$0xff]  ;;  %v2463_v58 = vpop.f32.mrf.mxu3 }
 0x180   :  { %2964 = vmatpush.bf16.msrb.mxu1 %v4777_v43  ;;  %v2464_v0 = vadd.f32 %v2463_v58, %v1804_v40 }
 0x181   :  { %2611 = vmatpush.bf16.msrb.mxu0 %v4227_v61  ;;  %v2462_v61 = vadd.f32 %v2461_v47, %v1804_v40 }
 0x183   :  { %2653 = vmatpush.bf16.msra.mxu2 %v4103_v57  ;;  %v4772_v57 = vld [vmem:[%s5164_s5 + $0x40] sm:$0xff] }
 0x184   :  { %2965 = vmatpush.bf16.msrb.mxu1 %v4776_v54 }
 0x185   :  { %2612 = vmatpush.bf16.msrb.mxu0 %v4211_v5 }
 0x187   :  { %2654 = vmatpush.bf16.msra.mxu2 %v4087_v62 }
 0x188   :  { %2966 = vmatpush.bf16.msrb.mxu1 %v4775_v46 }
 0x189   :  { %2613 = vmatpush.bf16.msrb.mxu0 %v4195_v13  ;;  %v4781_v13 = vld [vmem:[%s5164_s5 + $0x88] sm:$0xff] }
 0x18b   :  { %2655 = vmatpush.bf16.msra.mxu2 %v4071_v3 }
 0x18c   :  { %2614 = vmatmul.bf16.vlgmr.msrb.gmra.mxu0 %v5037_v33  ;;  %2967 = vmatpush.bf16.msrb.mxu1 %v4774_v49  ;;  %v4789_v49 = vld [vmem:[%s5164_s5 + $0xc8] sm:$0xff] }
 0x18d   :  { %2662 = vmatpush.bf16.msra.mxu0 %v4311_v14 }
 0x18e   :  { %2656 = vmatmul.bf16.vlgmr.msra.gmra.mxu2 %v5031_v27  ;;  %v4741_v27 = vld [vmem:[#allocation4 + $0x34c] sm:$0xf] }
 0x18f   :  { %v4231_v26 = vor.u32 %v4741_v27, %v4228_v4  ;;  %v2475_v7 = vpop.f32.mrf.mxu1  ;;  %2976 = vmatpush.bf16.msrb.mxu2 %v4787_v9  ;;  %v4793_v4 = vld [vmem:[%s5164_s5 + $0xe8] sm:$0xff] }
 0x190   :  { %2968 = vmatpush.bf16.msrb.mxu1 %v4773_v52  ;;  %v2476_v1 = vadd.f32 %v2475_v7, %v2462_v61 }
 0x191   :  { %2663 = vmatpush.bf16.msra.mxu0 %v4295_v16 }
 0x193   :  { %2977 = vmatpush.bf16.msrb.mxu2 %v4786_v51 }
 0x194   :  { %2969 = vmatpush.bf16.msrb.mxu1 %v4772_v57 }
 0x195   :  { %2664 = vmatpush.bf16.msra.mxu0 %v4279_v19  ;;  %v1805_v19 = vperm.slane %v5102_v56, 1 }
 0x197   :  { %2978 = vmatpush.bf16.msrb.mxu2 %v4785_v53  ;;  %v2477_v60 = vpop.f32.mrf.mxu1  ;;  %v2517_v63 = vpop.f32.mrf.mxu3 }
 0x198   :  { %v2478_v5 = vadd.f32 %v2477_v60, %v2464_v0  ;;  %v2518_v27 = vadd.f32 %v2517_v63, %v1805_v19 }
 0x199   :  { %2665 = vmatpush.bf16.msra.mxu0 %v4263_v23 }
 0x19b   :  { %2979 = vmatpush.bf16.msrb.mxu2 %v4784_v37  ;;  %v4788_v37 = vld [vmem:[%s5164_s5 + $0xc0] sm:$0xff] }
 0x19d   :  { %2666 = vmatpush.bf16.msra.mxu0 %v4247_v25 }
 0x19f   :  { %2980 = vmatpush.bf16.msrb.mxu2 %v4783_v42  ;;  %v2531_v3 = vpop.f32.mrf.mxu1  ;;  %v2519_v20 = vpop.f32.mrf.mxu3 }
 0x1a0   :  { %v2532_v50 = vadd.f32 %v2531_v3, %v2518_v27 }
 0x1a1   :  { %2667 = vmatpush.bf16.msra.mxu0 %v4231_v26  ;;  %v2520_v26 = vadd.f32 %v2519_v20, %v1805_v19 }
 0x1a3   :  { %2981 = vmatpush.bf16.msrb.mxu2 %v4782_v2  ;;  %v1807_v2 = vperm.slane %v5102_v56, 3 }
 0x1a5   :  { %2668 = vmatpush.bf16.msra.mxu0 %v4215_v21 }
 0x1a7   :  { %2982 = vmatpush.bf16.msrb.mxu2 %v4781_v13  ;;  %v2533_v23 = vpop.f32.mrf.mxu1 }
 0x1a8   :  { %v2534_v28 = vadd.f32 %v2533_v23, %v2520_v26 }
 0x1a9   :  { %2669 = vmatpush.bf16.msra.mxu0 %v4199_v31 }
 0x1ab   :  { %2983 = vmatpush.bf16.msrb.mxu2 %v4780_v17 }
 0x1ac   :  { %2670 = vmatmul.bf16.vlgmr.msra.gmra.mxu0 %v5037_v33  ;;  %v4767_v33 = vld [vmem:[%s5164_s5 + $0x18] sm:$0xff] }
 0x1ad   :  { %2952 = vmatpush.bf16.msrb.mxu3 %v4767_v33  ;;  %2990 = vmatpush.bf16.msrb.mxu0 %v4795_v18 }
 0x1b0   :  { %v2587_v8 = vpop.f32.mrf.mxu1 }
 0x1b1   :  { %2953 = vmatpush.bf16.msrb.mxu3 %v4766_v38  ;;  %2991 = vmatpush.bf16.msrb.mxu0 %v4794_v55 }
 0x1b5   :  { %2954 = vmatpush.bf16.msrb.mxu3 %v4765_v41  ;;  %2992 = vmatpush.bf16.msrb.mxu0 %v4793_v4  ;;  %v1806_v41 = vperm.slane %v5102_v56, 2  ;;  %v4800_v56 = vld [vmem:[%s5165_s6] ss:$0 sm:$0xff] }
 0x1b7   :  { %v2573_v30 = vpop.f32.mrf.mxu3 }
 0x1b8   :  { %v2574_v9 = vadd.f32 %v2573_v30, %v1806_v41  ;;  %v2589_v7 = vpop.f32.mrf.mxu1 }
 0x1b9   :  { %2955 = vmatpush.bf16.msrb.mxu3 %v4764_v44  ;;  %2993 = vmatpush.bf16.msrb.mxu0 %v4792_v29  ;;  %v4790_v44 = vld [vmem:[%s5164_s5 + $0xd0] sm:$0xff] }
 0x1bd   :  { %2994 = vmatpush.bf16.msrb.mxu0 %v4791_v39 }
 0x1bf   :  { %v2575_v54 = vpop.f32.mrf.mxu3 }
 0x1c0   :  { %v2576_v47 = vadd.f32 %v2575_v54, %v1806_v41 }
 0x1c1   :  { %2995 = vmatpush.bf16.msrb.mxu0 %v4790_v44 }
 0x1c2   :  { %v2590_v52 = vadd.f32 %v2589_v7, %v2576_v47 }
 0x1c5   :  { %2996 = vmatpush.bf16.msrb.mxu0 %v4789_v49 }
 0x1c9   :  { %2997 = vmatpush.bf16.msrb.mxu0 %v4788_v37 }
 0x1cb   :  { %v2489_v48 = vpop.f32.mrf.mxu2 }
 0x1cc   :  { %v2490_v6 = vadd.f32 %v2489_v48, %v2476_v1  ;;  %v2588_v48 = vadd.f32 %v2587_v8, %v2574_v9 }
 0x1d2   :  { %v2643_v0 = vpop.f32.mrf.mxu1 }
 0x1d3   :  { %v2491_v59 = vpop.f32.mrf.mxu2 }
 0x1d4   :  { %v2492_v10 = vadd.f32 %v2491_v59, %v2478_v5 }
 0x1d7   :  { %v2629_v61 = vpop.f32.mrf.mxu3 }
 0x1d8   :  { %v2630_v5 = vadd.f32 %v2629_v61, %v1807_v2 }
 0x1db   :  { %v2545_v11 = vpop.f32.mrf.mxu2 }
 0x1dc   :  { %v2546_v21 = vadd.f32 %v2545_v11, %v2532_v50 }
 0x1df   :  { %v2631_v63 = vpop.f32.mrf.mxu3 }
 0x1e0   :  { %v2632_v11 = vadd.f32 %v2631_v63, %v1807_v2 }
 0x1e3   :  { %v2547_v24 = vpop.f32.mrf.mxu2 }
 0x1e4   :  { %v2548_v31 = vadd.f32 %v2547_v24, %v2534_v28 }
 0x1e9   :  { %v2503_v62 = vpop.f32.mrf.mxu0 }
 0x1ea   :  { %v2504_v12 = vadd.f32 %v2503_v62, %v2490_v6  ;;  %v2645_v6 = vpop.f32.mrf.mxu1 }
 0x1eb   :  { %v2646_v13 = vadd.f32 %v2645_v6, %v2632_v11 }
 0x1ec   :  { %v2676_v35 = vmax.f32 %v2504_v12, 0.0 }
 0x1f1   :  { %v2505_v14 = vpop.f32.mrf.mxu0  ;;  %v2601_v33 = vpop.f32.mrf.mxu2 }
 0x1f2   :  { %v2506_v15 = vadd.f32 %v2505_v14, %v2492_v10  ;;  %v2602_v53 = vadd.f32 %v2601_v33, %v2588_v48  ;;  %v2644_v10 = vadd.f32 %v2643_v0, %v2630_v5 }
 0x1f4   :  { %v2680_v16 = vmax.f32 %v2506_v15, 0.0 }
 0x1f6   :  { %v2684_v22 = vpack.c.bf16 %v2680_v16, %v2676_v35 }
 0x1f8   :  { %2956 = vmatmul.bf16.vlgmr.msrb.gmra.mxu3 %v2684_v22 }
 0x1f9   :  { %v2559_v25 = vpop.f32.mrf.mxu0  ;;  %v2603_v51 = vpop.f32.mrf.mxu2 }
 0x1fa   :  { %v2560_v32 = vadd.f32 %v2559_v25, %v2546_v21  ;;  %v2604_v60 = vadd.f32 %v2603_v51, %v2590_v52 }
 0x1fc   :  { %v2677_v36 = vmax.f32 %v2560_v32, 0.0 }
 0x201   :  { %v2561_v34 = vpop.f32.mrf.mxu0 }
 0x202   :  { %v2562_v45 = vadd.f32 %v2561_v34, %v2548_v31 }
 0x204   :  { %v2681_v38 = vmax.f32 %v2562_v45, 0.0 }
 0x206   :  { %v2685_v43 = vpack.c.bf16 %v2681_v38, %v2677_v36 }
 0x208   :  { %2970 = vmatmul.bf16.vlgmr.msrb.gmra.mxu1 %v2685_v43 }
 0x209   :  { %v2615_v46 = vpop.f32.mrf.mxu0 }
 0x20a   :  { %v2616_v57 = vadd.f32 %v2615_v46, %v2602_v53 }
 0x20c   :  { %v2678_v40 = vmax.f32 %v2616_v57, 0.0 }
 0x211   :  { %v2617_v58 = vpop.f32.mrf.mxu0  ;;  %v2657_v1 = vpop.f32.mrf.mxu2 }
 0x212   :  { %v2618_v59 = vadd.f32 %v2617_v58, %v2604_v60  ;;  %v2658_v14 = vadd.f32 %v2657_v1, %v2644_v10 }
 0x214   :  { %v2682_v42 = vmax.f32 %v2618_v59, 0.0 }
 0x216   :  { %v2686_v62 = vpack.c.bf16 %v2682_v42, %v2678_v40 }
 0x218   :  { %2984 = vmatmul.bf16.vlgmr.msrb.gmra.mxu2 %v2686_v62 }
 0x219   :  { %v2659_v12 = vpop.f32.mrf.mxu2 }
 0x21a   :  { %v2660_v15 = vadd.f32 %v2659_v12, %v2646_v13 }
 0x229   :  { %v2671_v3 = vpop.f32.mrf.mxu0 }
 0x22a   :  { %v2672_v35 = vadd.f32 %v2671_v3, %v2658_v14 }
 0x22c   :  { %v2679_v18 = vmax.f32 %v2672_v35, 0.0 }
 0x231   :  { %v2673_v16 = vpop.f32.mrf.mxu0 }
 0x232   :  { %v2674_v17 = vadd.f32 %v2673_v16, %v2660_v15 }
 0x234   :  { %v2683_v19 = vmax.f32 %v2674_v17, 0.0 }
 0x236   :  { %v2687_v22 = vpack.c.bf16 %v2683_v19, %v2679_v18 }
 0x238   :  { %2998 = vmatmul.bf16.vlgmr.msrb.gmra.mxu0 %v2687_v22 }
 0x27b   :  { %v2957_v20 = vpop.f32.mrf.mxu3 }
 0x27c   :  { %v2958_v24 = vadd.f32 %v4800_v56, %v2957_v20 }
 0x283   :  { %v2959_v4 = vpop.f32.mrf.mxu3 }
 0x284   :  { %v2960_v21 = vadd.f32 %v4800_v56, %v2959_v4 }
 0x285   :  { %v2971_v23 = vpop.f32.mrf.mxu1 }
 0x286   :  { %v2972_v25 = vadd.f32 %v2971_v23, %v2958_v24 }
 0x28d   :  { %v2973_v28 = vpop.f32.mrf.mxu1 }
 0x28e   :  { %v2974_v30 = vadd.f32 %v2973_v28, %v2960_v21 }
 0x29b   :  { %v2985_v55 = vpop.f32.mrf.mxu2 }
 0x29c   :  { %v2986_v27 = vadd.f32 %v2985_v55, %v2972_v25 }
 0x2a3   :  { %v2987_v29 = vpop.f32.mrf.mxu2 }
 0x2a4   :  { %v2988_v31 = vadd.f32 %v2987_v29, %v2974_v30 }
 0x2b5   :  { %v2999_v26 = vpop.f32.mrf.mxu0 }
 0x2b6   :  { %v3000_v50 = vadd.f32 %v2999_v26, %v2986_v27 }
 0x2b8   :  { %3004 = vst [vmem:[%s5166_s7] sm:$0xff] %v3000_v50 }
 0x2bd   :  { %v3001_v32 = vpop.f32.mrf.mxu0 }
 0x2be   :  { %v3002_v8 = vadd.f32 %v3001_v32, %v2988_v31 }
 0x2c0   :  { %3005 = vst [vmem:[%s5166_s7 + $0x8] sm:$0xff] %v3002_v8 }
 0x2c1   :  { %3010 = vsyncpa [#allocation3], 1 }
 0x2c2   :  { %3011 = vsyncpa [#allocation5], 1 }

</bundles_post_ra>
